<compile_context>
chip_gen: v7x
topology: tpu7x:2x2x1
jax: 0.10.0
libtpu: 0.0.40
codegen_flags: <defaults>
</compile_context>

<pallas_src>
import math
import jax
import jax.numpy as jnp
from jax.experimental import pallas as pl
from jax.experimental.pallas import tpu as pltpu

# ----------------------------- small BERT config -----------------------------
VOCAB = 100
TYPE_VOCAB = 2
MAX_POS = 64
HIDDEN = 32
N_HEADS = 4
HEAD_DIM = HIDDEN // N_HEADS
INTERMEDIATE = 4 * HIDDEN
N_LAYERS = 2
LN_EPS = 1e-12


# ------------------------------ in-kernel helpers -----------------------------
def _layernorm(x, g, b):
    mu = jnp.mean(x, axis=-1, keepdims=True)
    var = jnp.mean((x - mu) ** 2, axis=-1, keepdims=True)
    return (x - mu) * jax.lax.rsqrt(var + LN_EPS) * g + b


def _gelu(x):
    # TODO(synk): pytorch_pretrained_bert uses exact erf-GELU; tanh approximation is
    # used here for portable Mosaic lowering (max abs error ~1e-3).
    c = math.sqrt(2.0 / math.pi)
    return 0.5 * x * (1.0 + jnp.tanh(c * (x + 0.044715 * x * x * x)))


# ------------------------------ fused Pallas kernel ----------------------------
def _bert_fused_kernel(emb_ref, bias_ref, embg_ref, embb_ref,
                       wqkv_ref, bqkv_ref, wo_ref, bo_ref,
                       ln1g_ref, ln1b_ref, w1_ref, b1_ref,
                       w2_ref, b2_ref, ln2g_ref, ln2b_ref,
                       o_ref):
    """Whole BERT forward (post-embedding-sum) on the flattened (B*S, H) token axis."""
    BS, H = emb_ref.shape

    # Block-diagonal (B*S, B*S) additive attention bias, precomputed in the wrapper.
    # Broadcast over heads once, outside the layer loop (broadcast_in_dim is not CSE'd).
    bias3 = jnp.broadcast_to(bias_ref[...], (N_HEADS, BS, BS))

    # embedding LayerNorm (f32 statistics)
    h = _layernorm(emb_ref[...], embg_ref[...], embb_ref[...])          # (BS, H) f32

    for l in range(N_LAYERS):  # static unroll: all stacked layer weights stay VMEM-resident
        # ---- fused QKV projection; 1/sqrt(head_dim) pre-folded into the Q columns of
        #      wqkv/bqkv (done ONCE in fuse_params — do not re-apply the scale here). ----
        qkv = (jnp.dot(h.astype(jnp.bfloat16), wqkv_ref[l],
                       preferred_element_type=jnp.float32) + bqkv_ref[l])   # (BS, 3H) f32

        # Head-major relayout to (NH, BS, D) via static lane slices + leading-axis stack
        # (a (BS,NH,D)->(NH,BS,D) transpose would be a cross-sublane relayout; this form
        # lowers reliably on Mosaic).
        def _heads(off):
            return jnp.stack(
                [qkv[:, off + n * HEAD_DIM: off + (n + 1) * HEAD_DIM]
                 for n in range(N_HEADS)], axis=0)

        qh = _heads(0 * H).astype(jnp.bfloat16)                          # (NH, BS, D)
        kh = _heads(1 * H).astype(jnp.bfloat16)
        vh = _heads(2 * H).astype(jnp.bfloat16)

        # ---- all heads at once: one scores einsum, one softmax, one context einsum ----
        s = jnp.einsum('hqd,hkd->hqk', qh, kh,
                       preferred_element_type=jnp.float32)               # (NH, BS, BS)
        s = s + bias3                                                    # key mask + batch block-diag

        m = jnp.max(s, axis=-1, keepdims=True)
        e = jnp.exp(s - m)
        p = e * pl.reciprocal(jnp.sum(e, axis=-1, keepdims=True), approx=True)

        ctx = jnp.einsum('hqk,hkd->hqd', p.astype(jnp.bfloat16), vh,
                         preferred_element_type=jnp.float32)             # (NH, BS, D)
        # lane-contiguous (BS, H) context -> single K=H output projection
        ctx2 = jnp.concatenate([ctx[n] for n in range(N_HEADS)], axis=-1)

        attn_out = (jnp.dot(ctx2.astype(jnp.bfloat16), wo_ref[l],
                            preferred_element_type=jnp.float32) + bo_ref[l])
        h1 = _layernorm(h + attn_out, ln1g_ref[l], ln1b_ref[l])

        # ---- feed-forward (bf16 MXU operands, f32 accumulation & elementwise) ----
        inter = _gelu(jnp.dot(h1.astype(jnp.bfloat16), w1_ref[l],
                              preferred_element_type=jnp.float32) + b1_ref[l])
        ffn = (jnp.dot(inter.astype(jnp.bfloat16), w2_ref[l],
                       preferred_element_type=jnp.float32) + b2_ref[l])
        h = _layernorm(h1 + ffn, ln2g_ref[l], ln2b_ref[l])

    o_ref[...] = h.astype(o_ref.dtype)                                    # lane-dense 2D store


# ------------------------------- JAX wrappers ----------------------------------
def init_params(key):
    std = 0.02
    keys = iter(jax.random.split(key, 8 + N_LAYERS * 8))

    def nrm(shape):
        return (std * jax.random.normal(next(keys), shape)).astype(jnp.float32)

    params = {
        'word_emb': nrm((VOCAB, HIDDEN)),
        'pos_emb': nrm((MAX_POS, HIDDEN)),
        'type_emb': nrm((TYPE_VOCAB, HIDDEN)),
        'emb_ln_g': jnp.ones((1, HIDDEN), jnp.float32),
        'emb_ln_b': jnp.zeros((1, HIDDEN), jnp.float32),
        'layers': [],
    }
    for _ in range(N_LAYERS):
        params['layers'].append({
            'wq': nrm((HIDDEN, HIDDEN)), 'bq': jnp.zeros((1, HIDDEN), jnp.float32),
            'wk': nrm((HIDDEN, HIDDEN)), 'bk': jnp.zeros((1, HIDDEN), jnp.float32),
            'wv': nrm((HIDDEN, HIDDEN)), 'bv': jnp.zeros((1, HIDDEN), jnp.float32),
            'wo': nrm((HIDDEN, HIDDEN)), 'bo': jnp.zeros((1, HIDDEN), jnp.float32),
            'ln1_g': jnp.ones((1, HIDDEN), jnp.float32),
            'ln1_b': jnp.zeros((1, HIDDEN), jnp.float32),
            'w1': nrm((HIDDEN, INTERMEDIATE)),
            'b1': jnp.zeros((1, INTERMEDIATE), jnp.float32),
            'w2': nrm((INTERMEDIATE, HIDDEN)),
            'b2': jnp.zeros((1, HIDDEN), jnp.float32),
            'ln2_g': jnp.ones((1, HIDDEN), jnp.float32),
            'ln2_b': jnp.zeros((1, HIDDEN), jnp.float32),
        })
    return params


def fuse_params(params):
    """One-time weight prep: fuse Wq|Wk|Wv (1/sqrt(head_dim) folded into the Q columns —
    applied here exactly once), stack over layers, and store matmul weights as bf16
    (biases / LayerNorm params stay f32)."""
    scale = jnp.float32(1.0 / math.sqrt(HEAD_DIM))
    cols = {k: [] for k in ('wqkv', 'bqkv', 'wo', 'bo', 'ln1_g', 'ln1_b',
                            'w1', 'b1', 'w2', 'b2', 'ln2_g', 'ln2_b')}
    for lp in params['layers']:
        cols['wqkv'].append(jnp.concatenate([lp['wq'] * scale, lp['wk'], lp['wv']], axis=1))
        cols['bqkv'].append(jnp.concatenate([lp['bq'] * scale, lp['bk'], lp['bv']], axis=1))
        for k in ('wo', 'bo', 'ln1_g', 'ln1_b', 'w1', 'b1', 'w2', 'b2', 'ln2_g', 'ln2_b'):
            cols[k].append(lp[k])
    fused = {k: jnp.stack(v, axis=0) for k, v in cols.items()}
    for k in ('wqkv', 'wo', 'w1', 'w2'):           # bf16 MXU-resident weights
        fused[k] = fused[k].astype(jnp.bfloat16)
    fused.update({
        'word_emb': params['word_emb'], 'pos_emb': params['pos_emb'],
        'type_emb': params['type_emb'],
        'emb_ln_g': params['emb_ln_g'], 'emb_ln_b': params['emb_ln_b'],
    })
    return fused


def _attention_bias(mask):
    """(B*S, B*S) additive bias = (1-mask)*-1e4 per key, plus -1e4 for cross-batch pairs
    (folding the batch into the token axis; exp underflows cross-batch terms to exactly 0)."""
    B, S = mask.shape
    tok_batch = jnp.repeat(jnp.arange(B, dtype=jnp.int32), S)            # (BS,)
    same_batch = tok_batch[:, None] == tok_batch[None, :]                # (BS, BS)
    key_bias = (1.0 - mask.reshape(-1).astype(jnp.float32)) * jnp.float32(-10000.0)
    return jnp.where(same_batch, key_bias[None, :], jnp.float32(-10000.0))


def bert_forward(fp, x, segs, mask):
    """x, segs: [B, S] int32; mask: [B, S] float (1 = keep). Returns top_vec [B, S, H]."""
    B, S = x.shape
    # embedding gathers stay in XLA (data-dependent gather); everything else is one kernel.
    pos_ids = jnp.arange(S, dtype=jnp.int32)
    emb = (jnp.take(fp['word_emb'], x, axis=0)
           + jnp.take(fp['pos_emb'], pos_ids, axis=0)[None, :, :]
           + jnp.take(fp['type_emb'], segs, axis=0))
    emb2 = emb.reshape(B * S, HIDDEN)              # lane-dense 2D kernel input (fuses into gather)
    bias2d = _attention_bias(mask)                 # (BS, BS) f32, built once in XLA

    out2 = pl.pallas_call(
        _bert_fused_kernel,
        out_shape=jax.ShapeDtypeStruct((B * S, HIDDEN), jnp.float32),
        compiler_params=pltpu.CompilerParams(vmem_limit_bytes=32 * 1024 * 1024),
    )(emb2, bias2d, fp['emb_ln_g'], fp['emb_ln_b'],
      fp['wqkv'], fp['bqkv'], fp['wo'], fp['bo'],
      fp['ln1_g'], fp['ln1_b'], fp['w1'], fp['b1'],
      fp['w2'], fp['b2'], fp['ln2_g'], fp['ln2_b'])
    return out2.reshape(B, S, HIDDEN)              # reshape back outside the kernel


if __name__ == "__main__":
    B, S = 2, 8
    key = jax.random.PRNGKey(0)
    k_param, k_ids, k_seg = jax.random.split(key, 3)

    params = init_params(k_param)
    fused = fuse_params(params)

    x = jax.random.randint(k_ids, (B, S), 0, VOCAB, dtype=jnp.int32)
    segs = jax.random.randint(k_seg, (B, S), 0, TYPE_VOCAB, dtype=jnp.int32)
    mask = jnp.ones((B, S), jnp.float32).at[1, S - 2:].set(0.0)  # pad last 2 tokens of batch 1

    fwd = jax.jit(bert_forward)
    top_vec = fwd(fused, x, segs, mask)
    jax.block_until_ready(top_vec)
    assert top_vec.shape == (B, S, HIDDEN) and top_vec.dtype == jnp.float32
    print("KERNEL_OK")
</pallas_src>

<mosaic_0001>
module attributes {stable_mosaic.version = 11 : i64} {
  func.func @_bert_fused_kernel(%arg0: memref<16x32xf32, #tpu.memory_space<vmem>>, %arg1: memref<16x16xf32, #tpu.memory_space<vmem>>, %arg2: memref<1x32xf32, #tpu.memory_space<vmem>>, %arg3: memref<1x32xf32, #tpu.memory_space<vmem>>, %arg4: memref<2x32x96xbf16, #tpu.memory_space<vmem>>, %arg5: memref<2x1x96xf32, #tpu.memory_space<vmem>>, %arg6: memref<2x32x32xbf16, #tpu.memory_space<vmem>>, %arg7: memref<2x1x32xf32, #tpu.memory_space<vmem>>, %arg8: memref<2x1x32xf32, #tpu.memory_space<vmem>>, %arg9: memref<2x1x32xf32, #tpu.memory_space<vmem>>, %arg10: memref<2x32x128xbf16, #tpu.memory_space<vmem>>, %arg11: memref<2x1x128xf32, #tpu.memory_space<vmem>>, %arg12: memref<2x128x32xbf16, #tpu.memory_space<vmem>>, %arg13: memref<2x1x32xf32, #tpu.memory_space<vmem>>, %arg14: memref<2x1x32xf32, #tpu.memory_space<vmem>>, %arg15: memref<2x1x32xf32, #tpu.memory_space<vmem>>, %arg16: memref<16x32xf32, #tpu.memory_space<vmem>>) attributes {dimension_semantics = [], scalar_prefetch = 0 : i64, scratch_operands = 0 : i64, tpu.core_type = #tpu.core_type<tc>} {
    %c0 = arith.constant 0 : index
    %c0_0 = arith.constant 0 : index
    %0 = vector.load %arg1[%c0, %c0_0] : memref<16x16xf32, #tpu.memory_space<vmem>>, vector<16x16xf32>
    %1 = vector.shape_cast %0 : vector<16x16xf32> to vector<1x16x16xf32>
    %2 = vector.broadcast %1 : vector<1x16x16xf32> to vector<4x16x16xf32>
    %c0_1 = arith.constant 0 : index
    %c0_2 = arith.constant 0 : index
    %3 = vector.load %arg0[%c0_1, %c0_2] : memref<16x32xf32, #tpu.memory_space<vmem>>, vector<16x32xf32>
    %c0_3 = arith.constant 0 : index
    %c0_4 = arith.constant 0 : index
    %4 = vector.load %arg2[%c0_3, %c0_4] : memref<1x32xf32, #tpu.memory_space<vmem>>, vector<1x32xf32>
    %c0_5 = arith.constant 0 : index
    %c0_6 = arith.constant 0 : index
    %5 = vector.load %arg3[%c0_5, %c0_6] : memref<1x32xf32, #tpu.memory_space<vmem>>, vector<1x32xf32>
    %cst = arith.constant dense<0.000000e+00> : vector<16xf32>
    %6 = vector.multi_reduction <add>, %3, %cst [1] : vector<16x32xf32> to vector<16xf32>
    %7 = vector.shape_cast %6 : vector<16xf32> to vector<16x1xf32>
    %cst_7 = arith.constant 3.200000e+01 : f32
    %8 = vector.broadcast %cst_7 : f32 to vector<16x1xf32>
    %9 = arith.divf %7, %8 : vector<16x1xf32>
    %10 = vector.broadcast %9 : vector<16x1xf32> to vector<16x32xf32>
    %11 = arith.subf %3, %10 : vector<16x32xf32>
    %12 = arith.mulf %11, %11 : vector<16x32xf32>
    %cst_8 = arith.constant dense<0.000000e+00> : vector<16xf32>
    %13 = vector.multi_reduction <add>, %12, %cst_8 [1] : vector<16x32xf32> to vector<16xf32>
    %14 = vector.shape_cast %13 : vector<16xf32> to vector<16x1xf32>
    %cst_9 = arith.constant 3.200000e+01 : f32
    %15 = vector.broadcast %cst_9 : f32 to vector<16x1xf32>
    %16 = arith.divf %14, %15 : vector<16x1xf32>
    %17 = vector.broadcast %9 : vector<16x1xf32> to vector<16x32xf32>
    %18 = arith.subf %3, %17 : vector<16x32xf32>
    %cst_10 = arith.constant 9.99999996E-13 : f32
    %19 = vector.broadcast %cst_10 : f32 to vector<16x1xf32>
    %20 = arith.addf %16, %19 : vector<16x1xf32>
    %21 = math.rsqrt %20 : vector<16x1xf32>
    %22 = vector.broadcast %21 : vector<16x1xf32> to vector<16x32xf32>
    %23 = arith.mulf %18, %22 : vector<16x32xf32>
    %24 = vector.broadcast %4 : vector<1x32xf32> to vector<16x32xf32>
    %25 = arith.mulf %23, %24 : vector<16x32xf32>
    %26 = vector.broadcast %5 : vector<1x32xf32> to vector<16x32xf32>
    %27 = arith.addf %25, %26 : vector<16x32xf32>
    %28 = arith.truncf %27 : vector<16x32xf32> to vector<16x32xbf16>
    %c0_11 = arith.constant 0 : index
    %c0_12 = arith.constant 0 : index
    %c0_13 = arith.constant 0 : index
    %29 = vector.load %arg4[%c0_11, %c0_12, %c0_13] : memref<2x32x96xbf16, #tpu.memory_space<vmem>>, vector<1x32x96xbf16>
    %30 = vector.shape_cast %29 : vector<1x32x96xbf16> to vector<32x96xbf16>
    %cst_14 = arith.constant dense<0.000000e+00> : vector<16x96xf32>
    %31 = tpu.matmul %28, %30, %cst_14 {dimension_numbers = #tpu.dot_dimension_numbers<[1], [0], [0], [1], [0, 0, 1, 1], [], []>} : vector<16x32xbf16>, vector<32x96xbf16>, vector<16x96xf32> -> vector<16x96xf32>
    %c0_15 = arith.constant 0 : index
    %c0_16 = arith.constant 0 : index
    %c0_17 = arith.constant 0 : index
    %32 = vector.load %arg5[%c0_15, %c0_16, %c0_17] : memref<2x1x96xf32, #tpu.memory_space<vmem>>, vector<1x1x96xf32>
    %33 = vector.shape_cast %32 : vector<1x1x96xf32> to vector<1x96xf32>
    %34 = vector.broadcast %33 : vector<1x96xf32> to vector<16x96xf32>
    %35 = arith.addf %31, %34 : vector<16x96xf32>
    %36 = vector.extract_strided_slice %35 {offsets = [0, 0], sizes = [16, 8], strides = [1, 1]} : vector<16x96xf32> to vector<16x8xf32>
    %37 = vector.extract_strided_slice %35 {offsets = [0, 8], sizes = [16, 8], strides = [1, 1]} : vector<16x96xf32> to vector<16x8xf32>
    %38 = vector.extract_strided_slice %35 {offsets = [0, 16], sizes = [16, 8], strides = [1, 1]} : vector<16x96xf32> to vector<16x8xf32>
    %39 = vector.extract_strided_slice %35 {offsets = [0, 24], sizes = [16, 8], strides = [1, 1]} : vector<16x96xf32> to vector<16x8xf32>
    %40 = vector.shape_cast %36 : vector<16x8xf32> to vector<1x16x8xf32>
    %41 = vector.shape_cast %37 : vector<16x8xf32> to vector<1x16x8xf32>
    %42 = vector.shape_cast %38 : vector<16x8xf32> to vector<1x16x8xf32>
    %43 = vector.shape_cast %39 : vector<16x8xf32> to vector<1x16x8xf32>
    %44 = tpu.concatenate %40, %41, %42, %43 in 0 : vector<1x16x8xf32>, vector<1x16x8xf32>, vector<1x16x8xf32>, vector<1x16x8xf32> -> vector<4x16x8xf32>
    %45 = arith.truncf %44 : vector<4x16x8xf32> to vector<4x16x8xbf16>
    %46 = vector.extract_strided_slice %35 {offsets = [0, 32], sizes = [16, 8], strides = [1, 1]} : vector<16x96xf32> to vector<16x8xf32>
    %47 = vector.extract_strided_slice %35 {offsets = [0, 40], sizes = [16, 8], strides = [1, 1]} : vector<16x96xf32> to vector<16x8xf32>
    %48 = vector.extract_strided_slice %35 {offsets = [0, 48], sizes = [16, 8], strides = [1, 1]} : vector<16x96xf32> to vector<16x8xf32>
    %49 = vector.extract_strided_slice %35 {offsets = [0, 56], sizes = [16, 8], strides = [1, 1]} : vector<16x96xf32> to vector<16x8xf32>
    %50 = vector.shape_cast %46 : vector<16x8xf32> to vector<1x16x8xf32>
    %51 = vector.shape_cast %47 : vector<16x8xf32> to vector<1x16x8xf32>
    %52 = vector.shape_cast %48 : vector<16x8xf32> to vector<1x16x8xf32>
    %53 = vector.shape_cast %49 : vector<16x8xf32> to vector<1x16x8xf32>
    %54 = tpu.concatenate %50, %51, %52, %53 in 0 : vector<1x16x8xf32>, vector<1x16x8xf32>, vector<1x16x8xf32>, vector<1x16x8xf32> -> vector<4x16x8xf32>
    %55 = arith.truncf %54 : vector<4x16x8xf32> to vector<4x16x8xbf16>
    %56 = vector.extract_strided_slice %35 {offsets = [0, 64], sizes = [16, 8], strides = [1, 1]} : vector<16x96xf32> to vector<16x8xf32>
    %57 = vector.extract_strided_slice %35 {offsets = [0, 72], sizes = [16, 8], strides = [1, 1]} : vector<16x96xf32> to vector<16x8xf32>
    %58 = vector.extract_strided_slice %35 {offsets = [0, 80], sizes = [16, 8], strides = [1, 1]} : vector<16x96xf32> to vector<16x8xf32>
    %59 = vector.extract_strided_slice %35 {offsets = [0, 88], sizes = [16, 8], strides = [1, 1]} : vector<16x96xf32> to vector<16x8xf32>
    %60 = vector.shape_cast %56 : vector<16x8xf32> to vector<1x16x8xf32>
    %61 = vector.shape_cast %57 : vector<16x8xf32> to vector<1x16x8xf32>
    %62 = vector.shape_cast %58 : vector<16x8xf32> to vector<1x16x8xf32>
    %63 = vector.shape_cast %59 : vector<16x8xf32> to vector<1x16x8xf32>
    %64 = tpu.concatenate %60, %61, %62, %63 in 0 : vector<1x16x8xf32>, vector<1x16x8xf32>, vector<1x16x8xf32>, vector<1x16x8xf32> -> vector<4x16x8xf32>
    %65 = arith.truncf %64 : vector<4x16x8xf32> to vector<4x16x8xbf16>
    "tpu.trace_start"() <{level = 10 : i32, message = "hqd,hkd->hqk"}> : () -> ()
    %cst_18 = arith.constant dense<0.000000e+00> : vector<4x16x16xf32>
    %66 = tpu.matmul %45, %55, %cst_18 {dimension_numbers = #tpu.dot_dimension_numbers<[2], [2], [1], [1], [0, 0, 0, 1, 1, 1], [0], [0]>} : vector<4x16x8xbf16>, vector<4x16x8xbf16>, vector<4x16x16xf32> -> vector<4x16x16xf32>
    "tpu.trace_stop"() : () -> ()
    %67 = arith.addf %66, %2 : vector<4x16x16xf32>
    %cst_19 = arith.constant dense<0xFF800000> : vector<4x16xf32>
    %68 = vector.multi_reduction <maximumf>, %67, %cst_19 [2] : vector<4x16x16xf32> to vector<4x16xf32>
    %69 = vector.shape_cast %68 : vector<4x16xf32> to vector<4x16x1xf32>
    %70 = vector.broadcast %69 : vector<4x16x1xf32> to vector<4x16x16xf32>
    %71 = arith.subf %67, %70 : vector<4x16x16xf32>
    %72 = math.exp %71 : vector<4x16x16xf32>
    %cst_20 = arith.constant dense<0.000000e+00> : vector<4x16xf32>
    %73 = vector.multi_reduction <add>, %72, %cst_20 [2] : vector<4x16x16xf32> to vector<4x16xf32>
    %74 = vector.shape_cast %73 : vector<4x16xf32> to vector<4x16x1xf32>
    %75 = tpu.reciprocal %74 {approx = true} : vector<4x16x1xf32> -> vector<4x16x1xf32>
    %76 = vector.broadcast %75 : vector<4x16x1xf32> to vector<4x16x16xf32>
    %77 = arith.mulf %72, %76 : vector<4x16x16xf32>
    %78 = arith.truncf %77 : vector<4x16x16xf32> to vector<4x16x16xbf16>
    "tpu.trace_start"() <{level = 10 : i32, message = "hqk,hkd->hqd"}> : () -> ()
    %cst_21 = arith.constant dense<0.000000e+00> : vector<4x16x8xf32>
    %79 = tpu.matmul %78, %65, %cst_21 {dimension_numbers = #tpu.dot_dimension_numbers<[2], [1], [1], [2], [0, 0, 0, 1, 1, 2], [0], [0]>} : vector<4x16x16xbf16>, vector<4x16x8xbf16>, vector<4x16x8xf32> -> vector<4x16x8xf32>
    "tpu.trace_stop"() : () -> ()
    %80 = vector.extract_strided_slice %79 {offsets = [0, 0, 0], sizes = [1, 16, 8], strides = [1, 1, 1]} : vector<4x16x8xf32> to vector<1x16x8xf32>
    %81 = vector.shape_cast %80 : vector<1x16x8xf32> to vector<16x8xf32>
    %82 = vector.extract_strided_slice %79 {offsets = [1, 0, 0], sizes = [1, 16, 8], strides = [1, 1, 1]} : vector<4x16x8xf32> to vector<1x16x8xf32>
    %83 = vector.shape_cast %82 : vector<1x16x8xf32> to vector<16x8xf32>
    %84 = vector.extract_strided_slice %79 {offsets = [2, 0, 0], sizes = [1, 16, 8], strides = [1, 1, 1]} : vector<4x16x8xf32> to vector<1x16x8xf32>
    %85 = vector.shape_cast %84 : vector<1x16x8xf32> to vector<16x8xf32>
    %86 = vector.extract_strided_slice %79 {offsets = [3, 0, 0], sizes = [1, 16, 8], strides = [1, 1, 1]} : vector<4x16x8xf32> to vector<1x16x8xf32>
    %87 = vector.shape_cast %86 : vector<1x16x8xf32> to vector<16x8xf32>
    %88 = tpu.concatenate %81, %83, %85, %87 in 1 : vector<16x8xf32>, vector<16x8xf32>, vector<16x8xf32>, vector<16x8xf32> -> vector<16x32xf32>
    %89 = arith.truncf %88 : vector<16x32xf32> to vector<16x32xbf16>
    %c0_22 = arith.constant 0 : index
    %c0_23 = arith.constant 0 : index
    %c0_24 = arith.constant 0 : index
    %90 = vector.load %arg6[%c0_22, %c0_23, %c0_24] : memref<2x32x32xbf16, #tpu.memory_space<vmem>>, vector<1x32x32xbf16>
    %91 = vector.shape_cast %90 : vector<1x32x32xbf16> to vector<32x32xbf16>
    %cst_25 = arith.constant dense<0.000000e+00> : vector<16x32xf32>
    %92 = tpu.matmul %89, %91, %cst_25 {dimension_numbers = #tpu.dot_dimension_numbers<[1], [0], [0], [1], [0, 0, 1, 1], [], []>} : vector<16x32xbf16>, vector<32x32xbf16>, vector<16x32xf32> -> vector<16x32xf32>
    %c0_26 = arith.constant 0 : index
    %c0_27 = arith.constant 0 : index
    %c0_28 = arith.constant 0 : index
    %93 = vector.load %arg7[%c0_26, %c0_27, %c0_28] : memref<2x1x32xf32, #tpu.memory_space<vmem>>, vector<1x1x32xf32>
    %94 = vector.shape_cast %93 : vector<1x1x32xf32> to vector<1x32xf32>
    %95 = vector.broadcast %94 : vector<1x32xf32> to vector<16x32xf32>
    %96 = arith.addf %92, %95 : vector<16x32xf32>
    %97 = arith.addf %27, %96 : vector<16x32xf32>
    %c0_29 = arith.constant 0 : index
    %c0_30 = arith.constant 0 : index
    %c0_31 = arith.constant 0 : index
    %98 = vector.load %arg8[%c0_29, %c0_30, %c0_31] : memref<2x1x32xf32, #tpu.memory_space<vmem>>, vector<1x1x32xf32>
    %99 = vector.shape_cast %98 : vector<1x1x32xf32> to vector<1x32xf32>
    %c0_32 = arith.constant 0 : index
    %c0_33 = arith.constant 0 : index
    %c0_34 = arith.constant 0 : index
    %100 = vector.load %arg9[%c0_32, %c0_33, %c0_34] : memref<2x1x32xf32, #tpu.memory_space<vmem>>, vector<1x1x32xf32>
    %101 = vector.shape_cast %100 : vector<1x1x32xf32> to vector<1x32xf32>
    %cst_35 = arith.constant dense<0.000000e+00> : vector<16xf32>
    %102 = vector.multi_reduction <add>, %97, %cst_35 [1] : vector<16x32xf32> to vector<16xf32>
    %103 = vector.shape_cast %102 : vector<16xf32> to vector<16x1xf32>
    %cst_36 = arith.constant 3.200000e+01 : f32
    %104 = vector.broadcast %cst_36 : f32 to vector<16x1xf32>
    %105 = arith.divf %103, %104 : vector<16x1xf32>
    %106 = vector.broadcast %105 : vector<16x1xf32> to vector<16x32xf32>
    %107 = arith.subf %97, %106 : vector<16x32xf32>
    %108 = arith.mulf %107, %107 : vector<16x32xf32>
    %cst_37 = arith.constant dense<0.000000e+00> : vector<16xf32>
    %109 = vector.multi_reduction <add>, %108, %cst_37 [1] : vector<16x32xf32> to vector<16xf32>
    %110 = vector.shape_cast %109 : vector<16xf32> to vector<16x1xf32>
    %cst_38 = arith.constant 3.200000e+01 : f32
    %111 = vector.broadcast %cst_38 : f32 to vector<16x1xf32>
    %112 = arith.divf %110, %111 : vector<16x1xf32>
    %113 = vector.broadcast %105 : vector<16x1xf32> to vector<16x32xf32>
    %114 = arith.subf %97, %113 : vector<16x32xf32>
    %cst_39 = arith.constant 9.99999996E-13 : f32
    %115 = vector.broadcast %cst_39 : f32 to vector<16x1xf32>
    %116 = arith.addf %112, %115 : vector<16x1xf32>
    %117 = math.rsqrt %116 : vector<16x1xf32>
    %118 = vector.broadcast %117 : vector<16x1xf32> to vector<16x32xf32>
    %119 = arith.mulf %114, %118 : vector<16x32xf32>
    %120 = vector.broadcast %99 : vector<1x32xf32> to vector<16x32xf32>
    %121 = arith.mulf %119, %120 : vector<16x32xf32>
    %122 = vector.broadcast %101 : vector<1x32xf32> to vector<16x32xf32>
    %123 = arith.addf %121, %122 : vector<16x32xf32>
    %124 = arith.truncf %123 : vector<16x32xf32> to vector<16x32xbf16>
    %c0_40 = arith.constant 0 : index
    %c0_41 = arith.constant 0 : index
    %c0_42 = arith.constant 0 : index
    %125 = vector.load %arg10[%c0_40, %c0_41, %c0_42] : memref<2x32x128xbf16, #tpu.memory_space<vmem>>, vector<1x32x128xbf16>
    %126 = vector.shape_cast %125 : vector<1x32x128xbf16> to vector<32x128xbf16>
    %cst_43 = arith.constant dense<0.000000e+00> : vector<16x128xf32>
    %127 = tpu.matmul %124, %126, %cst_43 {dimension_numbers = #tpu.dot_dimension_numbers<[1], [0], [0], [1], [0, 0, 1, 1], [], []>} : vector<16x32xbf16>, vector<32x128xbf16>, vector<16x128xf32> -> vector<16x128xf32>
    %c0_44 = arith.constant 0 : index
    %c0_45 = arith.constant 0 : index
    %c0_46 = arith.constant 0 : index
    %128 = vector.load %arg11[%c0_44, %c0_45, %c0_46] : memref<2x1x128xf32, #tpu.memory_space<vmem>>, vector<1x1x128xf32>
    %129 = vector.shape_cast %128 : vector<1x1x128xf32> to vector<1x128xf32>
    %130 = vector.broadcast %129 : vector<1x128xf32> to vector<16x128xf32>
    %131 = arith.addf %127, %130 : vector<16x128xf32>
    %cst_47 = arith.constant 5.000000e-01 : f32
    %132 = vector.broadcast %cst_47 : f32 to vector<16x128xf32>
    %133 = arith.mulf %132, %131 : vector<16x128xf32>
    %cst_48 = arith.constant 4.471500e-02 : f32
    %134 = vector.broadcast %cst_48 : f32 to vector<16x128xf32>
    %135 = arith.mulf %134, %131 : vector<16x128xf32>
    %136 = arith.mulf %135, %131 : vector<16x128xf32>
    %137 = arith.mulf %136, %131 : vector<16x128xf32>
    %138 = arith.addf %131, %137 : vector<16x128xf32>
    %cst_49 = arith.constant 0.797884583 : f32
    %139 = vector.broadcast %cst_49 : f32 to vector<16x128xf32>
    %140 = arith.mulf %139, %138 : vector<16x128xf32>
    %141 = math.tanh %140 : vector<16x128xf32>
    %cst_50 = arith.constant 1.000000e+00 : f32
    %142 = vector.broadcast %cst_50 : f32 to vector<16x128xf32>
    %143 = arith.addf %142, %141 : vector<16x128xf32>
    %144 = arith.mulf %133, %143 : vector<16x128xf32>
    %145 = arith.truncf %144 : vector<16x128xf32> to vector<16x128xbf16>
    %c0_51 = arith.constant 0 : index
    %c0_52 = arith.constant 0 : index
    %c0_53 = arith.constant 0 : index
    %146 = vector.load %arg12[%c0_51, %c0_52, %c0_53] : memref<2x128x32xbf16, #tpu.memory_space<vmem>>, vector<1x128x32xbf16>
    %147 = vector.shape_cast %146 : vector<1x128x32xbf16> to vector<128x32xbf16>
    %cst_54 = arith.constant dense<0.000000e+00> : vector<16x32xf32>
    %148 = tpu.matmul %145, %147, %cst_54 {dimension_numbers = #tpu.dot_dimension_numbers<[1], [0], [0], [1], [0, 0, 1, 1], [], []>} : vector<16x128xbf16>, vector<128x32xbf16>, vector<16x32xf32> -> vector<16x32xf32>
    %c0_55 = arith.constant 0 : index
    %c0_56 = arith.constant 0 : index
    %c0_57 = arith.constant 0 : index
    %149 = vector.load %arg13[%c0_55, %c0_56, %c0_57] : memref<2x1x32xf32, #tpu.memory_space<vmem>>, vector<1x1x32xf32>
    %150 = vector.shape_cast %149 : vector<1x1x32xf32> to vector<1x32xf32>
    %151 = vector.broadcast %150 : vector<1x32xf32> to vector<16x32xf32>
    %152 = arith.addf %148, %151 : vector<16x32xf32>
    %153 = arith.addf %123, %152 : vector<16x32xf32>
    %c0_58 = arith.constant 0 : index
    %c0_59 = arith.constant 0 : index
    %c0_60 = arith.constant 0 : index
    %154 = vector.load %arg14[%c0_58, %c0_59, %c0_60] : memref<2x1x32xf32, #tpu.memory_space<vmem>>, vector<1x1x32xf32>
    %155 = vector.shape_cast %154 : vector<1x1x32xf32> to vector<1x32xf32>
    %c0_61 = arith.constant 0 : index
    %c0_62 = arith.constant 0 : index
    %c0_63 = arith.constant 0 : index
    %156 = vector.load %arg15[%c0_61, %c0_62, %c0_63] : memref<2x1x32xf32, #tpu.memory_space<vmem>>, vector<1x1x32xf32>
    %157 = vector.shape_cast %156 : vector<1x1x32xf32> to vector<1x32xf32>
    %cst_64 = arith.constant dense<0.000000e+00> : vector<16xf32>
    %158 = vector.multi_reduction <add>, %153, %cst_64 [1] : vector<16x32xf32> to vector<16xf32>
    %159 = vector.shape_cast %158 : vector<16xf32> to vector<16x1xf32>
    %cst_65 = arith.constant 3.200000e+01 : f32
    %160 = vector.broadcast %cst_65 : f32 to vector<16x1xf32>
    %161 = arith.divf %159, %160 : vector<16x1xf32>
    %162 = vector.broadcast %161 : vector<16x1xf32> to vector<16x32xf32>
    %163 = arith.subf %153, %162 : vector<16x32xf32>
    %164 = arith.mulf %163, %163 : vector<16x32xf32>
    %cst_66 = arith.constant dense<0.000000e+00> : vector<16xf32>
    %165 = vector.multi_reduction <add>, %164, %cst_66 [1] : vector<16x32xf32> to vector<16xf32>
    %166 = vector.shape_cast %165 : vector<16xf32> to vector<16x1xf32>
    %cst_67 = arith.constant 3.200000e+01 : f32
    %167 = vector.broadcast %cst_67 : f32 to vector<16x1xf32>
    %168 = arith.divf %166, %167 : vector<16x1xf32>
    %169 = vector.broadcast %161 : vector<16x1xf32> to vector<16x32xf32>
    %170 = arith.subf %153, %169 : vector<16x32xf32>
    %cst_68 = arith.constant 9.99999996E-13 : f32
    %171 = vector.broadcast %cst_68 : f32 to vector<16x1xf32>
    %172 = arith.addf %168, %171 : vector<16x1xf32>
    %173 = math.rsqrt %172 : vector<16x1xf32>
    %174 = vector.broadcast %173 : vector<16x1xf32> to vector<16x32xf32>
    %175 = arith.mulf %170, %174 : vector<16x32xf32>
    %176 = vector.broadcast %155 : vector<1x32xf32> to vector<16x32xf32>
    %177 = arith.mulf %175, %176 : vector<16x32xf32>
    %178 = vector.broadcast %157 : vector<1x32xf32> to vector<16x32xf32>
    %179 = arith.addf %177, %178 : vector<16x32xf32>
    %180 = arith.truncf %179 : vector<16x32xf32> to vector<16x32xbf16>
    %c1 = arith.constant 1 : index
    %c0_69 = arith.constant 0 : index
    %c0_70 = arith.constant 0 : index
    %181 = vector.load %arg4[%c1, %c0_69, %c0_70] : memref<2x32x96xbf16, #tpu.memory_space<vmem>>, vector<1x32x96xbf16>
    %182 = vector.shape_cast %181 : vector<1x32x96xbf16> to vector<32x96xbf16>
    %cst_71 = arith.constant dense<0.000000e+00> : vector<16x96xf32>
    %183 = tpu.matmul %180, %182, %cst_71 {dimension_numbers = #tpu.dot_dimension_numbers<[1], [0], [0], [1], [0, 0, 1, 1], [], []>} : vector<16x32xbf16>, vector<32x96xbf16>, vector<16x96xf32> -> vector<16x96xf32>
    %c1_72 = arith.constant 1 : index
    %c0_73 = arith.constant 0 : index
    %c0_74 = arith.constant 0 : index
    %184 = vector.load %arg5[%c1_72, %c0_73, %c0_74] : memref<2x1x96xf32, #tpu.memory_space<vmem>>, vector<1x1x96xf32>
    %185 = vector.shape_cast %184 : vector<1x1x96xf32> to vector<1x96xf32>
    %186 = vector.broadcast %185 : vector<1x96xf32> to vector<16x96xf32>
    %187 = arith.addf %183, %186 : vector<16x96xf32>
    %188 = vector.extract_strided_slice %187 {offsets = [0, 0], sizes = [16, 8], strides = [1, 1]} : vector<16x96xf32> to vector<16x8xf32>
    %189 = vector.extract_strided_slice %187 {offsets = [0, 8], sizes = [16, 8], strides = [1, 1]} : vector<16x96xf32> to vector<16x8xf32>
    %190 = vector.extract_strided_slice %187 {offsets = [0, 16], sizes = [16, 8], strides = [1, 1]} : vector<16x96xf32> to vector<16x8xf32>
    %191 = vector.extract_strided_slice %187 {offsets = [0, 24], sizes = [16, 8], strides = [1, 1]} : vector<16x96xf32> to vector<16x8xf32>
    %192 = vector.shape_cast %188 : vector<16x8xf32> to vector<1x16x8xf32>
    %193 = vector.shape_cast %189 : vector<16x8xf32> to vector<1x16x8xf32>
    %194 = vector.shape_cast %190 : vector<16x8xf32> to vector<1x16x8xf32>
    %195 = vector.shape_cast %191 : vector<16x8xf32> to vector<1x16x8xf32>
    %196 = tpu.concatenate %192, %193, %194, %195 in 0 : vector<1x16x8xf32>, vector<1x16x8xf32>, vector<1x16x8xf32>, vector<1x16x8xf32> -> vector<4x16x8xf32>
    %197 = arith.truncf %196 : vector<4x16x8xf32> to vector<4x16x8xbf16>
    %198 = vector.extract_strided_slice %187 {offsets = [0, 32], sizes = [16, 8], strides = [1, 1]} : vector<16x96xf32> to vector<16x8xf32>
    %199 = vector.extract_strided_slice %187 {offsets = [0, 40], sizes = [16, 8], strides = [1, 1]} : vector<16x96xf32> to vector<16x8xf32>
    %200 = vector.extract_strided_slice %187 {offsets = [0, 48], sizes = [16, 8], strides = [1, 1]} : vector<16x96xf32> to vector<16x8xf32>
    %201 = vector.extract_strided_slice %187 {offsets = [0, 56], sizes = [16, 8], strides = [1, 1]} : vector<16x96xf32> to vector<16x8xf32>
    %202 = vector.shape_cast %198 : vector<16x8xf32> to vector<1x16x8xf32>
    %203 = vector.shape_cast %199 : vector<16x8xf32> to vector<1x16x8xf32>
    %204 = vector.shape_cast %200 : vector<16x8xf32> to vector<1x16x8xf32>
    %205 = vector.shape_cast %201 : vector<16x8xf32> to vector<1x16x8xf32>
    %206 = tpu.concatenate %202, %203, %204, %205 in 0 : vector<1x16x8xf32>, vector<1x16x8xf32>, vector<1x16x8xf32>, vector<1x16x8xf32> -> vector<4x16x8xf32>
    %207 = arith.truncf %206 : vector<4x16x8xf32> to vector<4x16x8xbf16>
    %208 = vector.extract_strided_slice %187 {offsets = [0, 64], sizes = [16, 8], strides = [1, 1]} : vector<16x96xf32> to vector<16x8xf32>
    %209 = vector.extract_strided_slice %187 {offsets = [0, 72], sizes = [16, 8], strides = [1, 1]} : vector<16x96xf32> to vector<16x8xf32>
    %210 = vector.extract_strided_slice %187 {offsets = [0, 80], sizes = [16, 8], strides = [1, 1]} : vector<16x96xf32> to vector<16x8xf32>
    %211 = vector.extract_strided_slice %187 {offsets = [0, 88], sizes = [16, 8], strides = [1, 1]} : vector<16x96xf32> to vector<16x8xf32>
    %212 = vector.shape_cast %208 : vector<16x8xf32> to vector<1x16x8xf32>
    %213 = vector.shape_cast %209 : vector<16x8xf32> to vector<1x16x8xf32>
    %214 = vector.shape_cast %210 : vector<16x8xf32> to vector<1x16x8xf32>
    %215 = vector.shape_cast %211 : vector<16x8xf32> to vector<1x16x8xf32>
    %216 = tpu.concatenate %212, %213, %214, %215 in 0 : vector<1x16x8xf32>, vector<1x16x8xf32>, vector<1x16x8xf32>, vector<1x16x8xf32> -> vector<4x16x8xf32>
    %217 = arith.truncf %216 : vector<4x16x8xf32> to vector<4x16x8xbf16>
    "tpu.trace_start"() <{level = 10 : i32, message = "hqd,hkd->hqk"}> : () -> ()
    %cst_75 = arith.constant dense<0.000000e+00> : vector<4x16x16xf32>
    %218 = tpu.matmul %197, %207, %cst_75 {dimension_numbers = #tpu.dot_dimension_numbers<[2], [2], [1], [1], [0, 0, 0, 1, 1, 1], [0], [0]>} : vector<4x16x8xbf16>, vector<4x16x8xbf16>, vector<4x16x16xf32> -> vector<4x16x16xf32>
    "tpu.trace_stop"() : () -> ()
    %219 = arith.addf %218, %2 : vector<4x16x16xf32>
    %cst_76 = arith.constant dense<0xFF800000> : vector<4x16xf32>
    %220 = vector.multi_reduction <maximumf>, %219, %cst_76 [2] : vector<4x16x16xf32> to vector<4x16xf32>
    %221 = vector.shape_cast %220 : vector<4x16xf32> to vector<4x16x1xf32>
    %222 = vector.broadcast %221 : vector<4x16x1xf32> to vector<4x16x16xf32>
    %223 = arith.subf %219, %222 : vector<4x16x16xf32>
    %224 = math.exp %223 : vector<4x16x16xf32>
    %cst_77 = arith.constant dense<0.000000e+00> : vector<4x16xf32>
    %225 = vector.multi_reduction <add>, %224, %cst_77 [2] : vector<4x16x16xf32> to vector<4x16xf32>
    %226 = vector.shape_cast %225 : vector<4x16xf32> to vector<4x16x1xf32>
    %227 = tpu.reciprocal %226 {approx = true} : vector<4x16x1xf32> -> vector<4x16x1xf32>
    %228 = vector.broadcast %227 : vector<4x16x1xf32> to vector<4x16x16xf32>
    %229 = arith.mulf %224, %228 : vector<4x16x16xf32>
    %230 = arith.truncf %229 : vector<4x16x16xf32> to vector<4x16x16xbf16>
    "tpu.trace_start"() <{level = 10 : i32, message = "hqk,hkd->hqd"}> : () -> ()
    %cst_78 = arith.constant dense<0.000000e+00> : vector<4x16x8xf32>
    %231 = tpu.matmul %230, %217, %cst_78 {dimension_numbers = #tpu.dot_dimension_numbers<[2], [1], [1], [2], [0, 0, 0, 1, 1, 2], [0], [0]>} : vector<4x16x16xbf16>, vector<4x16x8xbf16>, vector<4x16x8xf32> -> vector<4x16x8xf32>
    "tpu.trace_stop"() : () -> ()
    %232 = vector.extract_strided_slice %231 {offsets = [0, 0, 0], sizes = [1, 16, 8], strides = [1, 1, 1]} : vector<4x16x8xf32> to vector<1x16x8xf32>
    %233 = vector.shape_cast %232 : vector<1x16x8xf32> to vector<16x8xf32>
    %234 = vector.extract_strided_slice %231 {offsets = [1, 0, 0], sizes = [1, 16, 8], strides = [1, 1, 1]} : vector<4x16x8xf32> to vector<1x16x8xf32>
    %235 = vector.shape_cast %234 : vector<1x16x8xf32> to vector<16x8xf32>
    %236 = vector.extract_strided_slice %231 {offsets = [2, 0, 0], sizes = [1, 16, 8], strides = [1, 1, 1]} : vector<4x16x8xf32> to vector<1x16x8xf32>
    %237 = vector.shape_cast %236 : vector<1x16x8xf32> to vector<16x8xf32>
    %238 = vector.extract_strided_slice %231 {offsets = [3, 0, 0], sizes = [1, 16, 8], strides = [1, 1, 1]} : vector<4x16x8xf32> to vector<1x16x8xf32>
    %239 = vector.shape_cast %238 : vector<1x16x8xf32> to vector<16x8xf32>
    %240 = tpu.concatenate %233, %235, %237, %239 in 1 : vector<16x8xf32>, vector<16x8xf32>, vector<16x8xf32>, vector<16x8xf32> -> vector<16x32xf32>
    %241 = arith.truncf %240 : vector<16x32xf32> to vector<16x32xbf16>
    %c1_79 = arith.constant 1 : index
    %c0_80 = arith.constant 0 : index
    %c0_81 = arith.constant 0 : index
    %242 = vector.load %arg6[%c1_79, %c0_80, %c0_81] : memref<2x32x32xbf16, #tpu.memory_space<vmem>>, vector<1x32x32xbf16>
    %243 = vector.shape_cast %242 : vector<1x32x32xbf16> to vector<32x32xbf16>
    %cst_82 = arith.constant dense<0.000000e+00> : vector<16x32xf32>
    %244 = tpu.matmul %241, %243, %cst_82 {dimension_numbers = #tpu.dot_dimension_numbers<[1], [0], [0], [1], [0, 0, 1, 1], [], []>} : vector<16x32xbf16>, vector<32x32xbf16>, vector<16x32xf32> -> vector<16x32xf32>
    %c1_83 = arith.constant 1 : index
    %c0_84 = arith.constant 0 : index
    %c0_85 = arith.constant 0 : index
    %245 = vector.load %arg7[%c1_83, %c0_84, %c0_85] : memref<2x1x32xf32, #tpu.memory_space<vmem>>, vector<1x1x32xf32>
    %246 = vector.shape_cast %245 : vector<1x1x32xf32> to vector<1x32xf32>
    %247 = vector.broadcast %246 : vector<1x32xf32> to vector<16x32xf32>
    %248 = arith.addf %244, %247 : vector<16x32xf32>
    %249 = arith.addf %179, %248 : vector<16x32xf32>
    %c1_86 = arith.constant 1 : index
    %c0_87 = arith.constant 0 : index
    %c0_88 = arith.constant 0 : index
    %250 = vector.load %arg8[%c1_86, %c0_87, %c0_88] : memref<2x1x32xf32, #tpu.memory_space<vmem>>, vector<1x1x32xf32>
    %251 = vector.shape_cast %250 : vector<1x1x32xf32> to vector<1x32xf32>
    %c1_89 = arith.constant 1 : index
    %c0_90 = arith.constant 0 : index
    %c0_91 = arith.constant 0 : index
    %252 = vector.load %arg9[%c1_89, %c0_90, %c0_91] : memref<2x1x32xf32, #tpu.memory_space<vmem>>, vector<1x1x32xf32>
    %253 = vector.shape_cast %252 : vector<1x1x32xf32> to vector<1x32xf32>
    %cst_92 = arith.constant dense<0.000000e+00> : vector<16xf32>
    %254 = vector.multi_reduction <add>, %249, %cst_92 [1] : vector<16x32xf32> to vector<16xf32>
    %255 = vector.shape_cast %254 : vector<16xf32> to vector<16x1xf32>
    %cst_93 = arith.constant 3.200000e+01 : f32
    %256 = vector.broadcast %cst_93 : f32 to vector<16x1xf32>
    %257 = arith.divf %255, %256 : vector<16x1xf32>
    %258 = vector.broadcast %257 : vector<16x1xf32> to vector<16x32xf32>
    %259 = arith.subf %249, %258 : vector<16x32xf32>
    %260 = arith.mulf %259, %259 : vector<16x32xf32>
    %cst_94 = arith.constant dense<0.000000e+00> : vector<16xf32>
    %261 = vector.multi_reduction <add>, %260, %cst_94 [1] : vector<16x32xf32> to vector<16xf32>
    %262 = vector.shape_cast %261 : vector<16xf32> to vector<16x1xf32>
    %cst_95 = arith.constant 3.200000e+01 : f32
    %263 = vector.broadcast %cst_95 : f32 to vector<16x1xf32>
    %264 = arith.divf %262, %263 : vector<16x1xf32>
    %265 = vector.broadcast %257 : vector<16x1xf32> to vector<16x32xf32>
    %266 = arith.subf %249, %265 : vector<16x32xf32>
    %cst_96 = arith.constant 9.99999996E-13 : f32
    %267 = vector.broadcast %cst_96 : f32 to vector<16x1xf32>
    %268 = arith.addf %264, %267 : vector<16x1xf32>
    %269 = math.rsqrt %268 : vector<16x1xf32>
    %270 = vector.broadcast %269 : vector<16x1xf32> to vector<16x32xf32>
    %271 = arith.mulf %266, %270 : vector<16x32xf32>
    %272 = vector.broadcast %251 : vector<1x32xf32> to vector<16x32xf32>
    %273 = arith.mulf %271, %272 : vector<16x32xf32>
    %274 = vector.broadcast %253 : vector<1x32xf32> to vector<16x32xf32>
    %275 = arith.addf %273, %274 : vector<16x32xf32>
    %276 = arith.truncf %275 : vector<16x32xf32> to vector<16x32xbf16>
    %c1_97 = arith.constant 1 : index
    %c0_98 = arith.constant 0 : index
    %c0_99 = arith.constant 0 : index
    %277 = vector.load %arg10[%c1_97, %c0_98, %c0_99] : memref<2x32x128xbf16, #tpu.memory_space<vmem>>, vector<1x32x128xbf16>
    %278 = vector.shape_cast %277 : vector<1x32x128xbf16> to vector<32x128xbf16>
    %cst_100 = arith.constant dense<0.000000e+00> : vector<16x128xf32>
    %279 = tpu.matmul %276, %278, %cst_100 {dimension_numbers = #tpu.dot_dimension_numbers<[1], [0], [0], [1], [0, 0, 1, 1], [], []>} : vector<16x32xbf16>, vector<32x128xbf16>, vector<16x128xf32> -> vector<16x128xf32>
    %c1_101 = arith.constant 1 : index
    %c0_102 = arith.constant 0 : index
    %c0_103 = arith.constant 0 : index
    %280 = vector.load %arg11[%c1_101, %c0_102, %c0_103] : memref<2x1x128xf32, #tpu.memory_space<vmem>>, vector<1x1x128xf32>
    %281 = vector.shape_cast %280 : vector<1x1x128xf32> to vector<1x128xf32>
    %282 = vector.broadcast %281 : vector<1x128xf32> to vector<16x128xf32>
    %283 = arith.addf %279, %282 : vector<16x128xf32>
    %cst_104 = arith.constant 5.000000e-01 : f32
    %284 = vector.broadcast %cst_104 : f32 to vector<16x128xf32>
    %285 = arith.mulf %284, %283 : vector<16x128xf32>
    %cst_105 = arith.constant 4.471500e-02 : f32
    %286 = vector.broadcast %cst_105 : f32 to vector<16x128xf32>
    %287 = arith.mulf %286, %283 : vector<16x128xf32>
    %288 = arith.mulf %287, %283 : vector<16x128xf32>
    %289 = arith.mulf %288, %283 : vector<16x128xf32>
    %290 = arith.addf %283, %289 : vector<16x128xf32>
    %cst_106 = arith.constant 0.797884583 : f32
    %291 = vector.broadcast %cst_106 : f32 to vector<16x128xf32>
    %292 = arith.mulf %291, %290 : vector<16x128xf32>
    %293 = math.tanh %292 : vector<16x128xf32>
    %cst_107 = arith.constant 1.000000e+00 : f32
    %294 = vector.broadcast %cst_107 : f32 to vector<16x128xf32>
    %295 = arith.addf %294, %293 : vector<16x128xf32>
    %296 = arith.mulf %285, %295 : vector<16x128xf32>
    %297 = arith.truncf %296 : vector<16x128xf32> to vector<16x128xbf16>
    %c1_108 = arith.constant 1 : index
    %c0_109 = arith.constant 0 : index
    %c0_110 = arith.constant 0 : index
    %298 = vector.load %arg12[%c1_108, %c0_109, %c0_110] : memref<2x128x32xbf16, #tpu.memory_space<vmem>>, vector<1x128x32xbf16>
    %299 = vector.shape_cast %298 : vector<1x128x32xbf16> to vector<128x32xbf16>
    %cst_111 = arith.constant dense<0.000000e+00> : vector<16x32xf32>
    %300 = tpu.matmul %297, %299, %cst_111 {dimension_numbers = #tpu.dot_dimension_numbers<[1], [0], [0], [1], [0, 0, 1, 1], [], []>} : vector<16x128xbf16>, vector<128x32xbf16>, vector<16x32xf32> -> vector<16x32xf32>
    %c1_112 = arith.constant 1 : index
    %c0_113 = arith.constant 0 : index
    %c0_114 = arith.constant 0 : index
    %301 = vector.load %arg13[%c1_112, %c0_113, %c0_114] : memref<2x1x32xf32, #tpu.memory_space<vmem>>, vector<1x1x32xf32>
    %302 = vector.shape_cast %301 : vector<1x1x32xf32> to vector<1x32xf32>
    %303 = vector.broadcast %302 : vector<1x32xf32> to vector<16x32xf32>
    %304 = arith.addf %300, %303 : vector<16x32xf32>
    %305 = arith.addf %275, %304 : vector<16x32xf32>
    %c1_115 = arith.constant 1 : index
    %c0_116 = arith.constant 0 : index
    %c0_117 = arith.constant 0 : index
    %306 = vector.load %arg14[%c1_115, %c0_116, %c0_117] : memref<2x1x32xf32, #tpu.memory_space<vmem>>, vector<1x1x32xf32>
    %307 = vector.shape_cast %306 : vector<1x1x32xf32> to vector<1x32xf32>
    %c1_118 = arith.constant 1 : index
    %c0_119 = arith.constant 0 : index
    %c0_120 = arith.constant 0 : index
    %308 = vector.load %arg15[%c1_118, %c0_119, %c0_120] : memref<2x1x32xf32, #tpu.memory_space<vmem>>, vector<1x1x32xf32>
    %309 = vector.shape_cast %308 : vector<1x1x32xf32> to vector<1x32xf32>
    %cst_121 = arith.constant dense<0.000000e+00> : vector<16xf32>
    %310 = vector.multi_reduction <add>, %305, %cst_121 [1] : vector<16x32xf32> to vector<16xf32>
    %311 = vector.shape_cast %310 : vector<16xf32> to vector<16x1xf32>
    %cst_122 = arith.constant 3.200000e+01 : f32
    %312 = vector.broadcast %cst_122 : f32 to vector<16x1xf32>
    %313 = arith.divf %311, %312 : vector<16x1xf32>
    %314 = vector.broadcast %313 : vector<16x1xf32> to vector<16x32xf32>
    %315 = arith.subf %305, %314 : vector<16x32xf32>
    %316 = arith.mulf %315, %315 : vector<16x32xf32>
    %cst_123 = arith.constant dense<0.000000e+00> : vector<16xf32>
    %317 = vector.multi_reduction <add>, %316, %cst_123 [1] : vector<16x32xf32> to vector<16xf32>
    %318 = vector.shape_cast %317 : vector<16xf32> to vector<16x1xf32>
    %cst_124 = arith.constant 3.200000e+01 : f32
    %319 = vector.broadcast %cst_124 : f32 to vector<16x1xf32>
    %320 = arith.divf %318, %319 : vector<16x1xf32>
    %321 = vector.broadcast %313 : vector<16x1xf32> to vector<16x32xf32>
    %322 = arith.subf %305, %321 : vector<16x32xf32>
    %cst_125 = arith.constant 9.99999996E-13 : f32
    %323 = vector.broadcast %cst_125 : f32 to vector<16x1xf32>
    %324 = arith.addf %320, %323 : vector<16x1xf32>
    %325 = math.rsqrt %324 : vector<16x1xf32>
    %326 = vector.broadcast %325 : vector<16x1xf32> to vector<16x32xf32>
    %327 = arith.mulf %322, %326 : vector<16x32xf32>
    %328 = vector.broadcast %307 : vector<1x32xf32> to vector<16x32xf32>
    %329 = arith.mulf %327, %328 : vector<16x32xf32>
    %330 = vector.broadcast %309 : vector<1x32xf32> to vector<16x32xf32>
    %331 = arith.addf %329, %330 : vector<16x32xf32>
    %c0_126 = arith.constant 0 : index
    %c0_127 = arith.constant 0 : index
    %332 = vector.load %arg16[%c0_126, %c0_127] : memref<16x32xf32, #tpu.memory_space<vmem>>, vector<16x32xf32>
    tpu.vector_store %arg16[%c0_126, %c0_127], %331 {strides = array<i32>} : memref<16x32xf32, #tpu.memory_space<vmem>>, vector<16x32xf32>,
    return
  }
}

</mosaic_0001>

<bundles_post_ra>
// kernel: bert_forward.1
= control target key start
LH: loop header
LB: loop body
LE: loop exit
PB: predicated region body
PF: predicated region fallthrough
CT: control target
= control target key end

     0   :  { %s3200_s0 = inlined_call_operand.vmem [shape: f32[16,32], index: 0, kind: input, shape index: {}]   ;;  %s3201_s1 = inlined_call_operand.vmem [shape: f32[16,16], index: 1, kind: input, shape index: {}]   ;;  %s3202_s2 = inlined_call_operand.vmem [shape: f32[1,32], index: 2, kind: input, shape index: {}]   ;;  %s3203_s3 = inlined_call_operand.vmem [shape: f32[1,32], index: 3, kind: input, shape index: {}]   ;;  %s3204_s4 = inlined_call_operand.vmem [shape: bf16[2,32,96], index: 4, kind: input, shape index: {}]   ;;  %s3205_s5 = inlined_call_operand.vmem [shape: f32[2,1,96], index: 5, kind: input, shape index: {}]   ;;  %s3206_s6 = inlined_call_operand.vmem [shape: bf16[2,32,32], index: 6, kind: input, shape index: {}]   ;;  %s3207_s7 = inlined_call_operand.vmem [shape: f32[2,1,32], index: 7, kind: input, shape index: {}]   ;;  %s3208_s8 = inlined_call_operand.vmem [shape: f32[2,1,32], index: 8, kind: input, shape index: {}]   ;;  %s3209_s9 = inlined_call_operand.vmem [shape: f32[2,1,32], index: 9, kind: input, shape index: {}]   ;;  %s3210_s10 = inlined_call_operand.vmem [shape: bf16[2,32,128], index: 10, kind: input, shape index: {}]   ;;  %s3211_s11 = inlined_call_operand.vmem [shape: f32[2,1,128], index: 11, kind: input, shape index: {}]   ;;  %s3212_s12 = inlined_call_operand.vmem [shape: bf16[2,128,32], index: 12, kind: input, shape index: {}]   ;;  %s3213_s13 = inlined_call_operand.vmem [shape: f32[2,1,32], index: 13, kind: input, shape index: {}]   ;;  %s3214_s14 = inlined_call_operand.vmem [shape: f32[2,1,32], index: 14, kind: input, shape index: {}]   ;;  %s3215_s15 = inlined_call_operand.vmem [shape: f32[2,1,32], index: 15, kind: input, shape index: {}]   ;;  %s3216_s16 = inlined_call_operand.hbm [shape: f32[16,32], index: 16, kind: output, shape index: {}]  }
   0x1   :  { %3218 = sst [smem:[#allocation5_spill]] %s3200_s0 }
   0x2   :  { %s3219_s23 = sld [smem:[#allocation5_spill]]  ;;  %vm61_vm0 = vcmask 261120  }
   0x8   :  { %v57_v0 = vld [vmem:[%s3219_s23] sm:$0xff]  ;;  %v58_v1 = vld [vmem:[%s3219_s23 + $0x8] sm:$0xff] }
   0x9   :  { %v62_v2 = vsel %vm61_vm0, %v57_v0, 0.0  ;;  %v65_v3 = vsel %vm61_vm0, %v58_v1, 0.0 }
   0xa   :  { %63 = vadd.xlane.f32.xlu0 %v62_v2 }
   0xe   :  { %66 = vadd.xlane.f32.xlu0 %v65_v3 }
   0xf   :  { %21 = vsyncpa [#allocation3], 0  ;;  %v2488_v14 = vld [vmem:[%s3204_s4] sm:$0xff]   ;;  %v2632_v15 = vmov 0.0   ;;  %v2489_v16 = vld [vmem:[%s3204_s4 + $0x8] sm:$0xff]   ;;  %vm2633_vm1 = vmmov 0  }
  0x10   :  { %2232 = vmatprep.subr.bf16.mxu1 %v2632_v15  ;;  %2258 = vmatprep.subr.bf16.mxu0 %v2632_v15  ;;  %v2060_v25 = vld [vmem:[%s3202_s2] ss:$0 sm:$0xff]  ;;  %s2635_s20 = smov 120   ;;  %s2636_s21 = smov 104   ;;  %vm200_vm2 = vcmask 64512   ;;  %vm398_vm3 = vcmask 130048  }
  0x11   :  { %2233 = vmatpush3.bf16.msra.mxu1 %v2488_v14  ;;  %2236 = vmatprep.mubr.msk.bf16.mxu1 %vm2633_vm1, %v2632_v15  ;;  %v2061_v29 = vld [vmem:[%s3203_s3] ss:$0 sm:$0xff]  ;;  %s2634_s3 = smov 112   ;;  %s2637_s22 = smov 96   ;;  %vm707_vm4 = vcmask 195584  }
  0x12   :  { %2234 = vmatprep.subr.bf16.mxu1 %v2632_v15  ;;  %2260 = vmatprep.mubr.msk.bf16.mxu0 %vm2633_vm1, %v2632_v15  ;;  %v2062_v34 = vld [vmem:[%s3205_s5] ss:$0 sm:$0xff]  ;;  %s2639_s0 = smov 8   ;;  %s2640_s17 = smov 16  }
  0x13   :  { %v2817_v63 = vld [vmem:[%s3201_s1] sm:$0xff]  ;;  %s2641_s18 = smov 24   ;;  %s2642_s2 = smov [#allocation2]  }
  0x14   :  { %s2049_s19 = sshll.u32 %s2642_s2, 4  ;;  %s2050_s19 = int_to_ptr.vmem [resolvable:$true] %s2049_s19 }
  0x15   :  { %2235 = vmatpush3.bf16.msra.mxu1 %v2489_v16  ;;  %p2613_p1 = scmp.lt.s32.totalorder %s2050_s19, %s2050_s19 }
  0x16   :  { %2240 = vmatprep.subr.bf16.mxu1 %v2632_v15 }
  0x97   :  { %v64_v4 = vpop.xlane.xlu0 %63 }
  0x98   :  { %v69_v5 = vmul.f32 0.03125, %v64_v4 }
  0x9a   :  { %v71_v6 = vsub.f32 %v57_v0, %v69_v5 }
  0x9b   :  { %v67_v7 = vpop.xlane.xlu0 %66 }
  0x9c   :  { %v70_v8 = vmul.f32 0.03125, %v67_v7  ;;  %v73_v9 = vmul.f32 %v71_v6, %v71_v6 }
  0x9e   :  { %v72_v10 = vsub.f32 %v58_v1, %v70_v8  ;;  %v75_v11 = vsel %vm61_vm0, %v73_v9, 0.0  ;;  %v2822_v1 = vld [vmem:[%s3201_s1 + $0x8] sm:$0xff]  ;;  %s2638_s1 = smov 64  }
  0x9f   :  { %76 = vadd.xlane.f32.xlu1 %v75_v11 }
  0xa0   :  { %v74_v12 = vmul.f32 %v72_v10, %v72_v10 }
  0xa2   :  { %v78_v13 = vsel %vm61_vm0, %v74_v12, 0.0 }
  0xa3   :  { %79 = vadd.xlane.f32.xlu1 %v78_v13 }
 0x12c   :  { %v77_v17 = vpop.xlane.xlu1 %76 }
 0x12d   :  { %v81_v18 = vmul.f32 0.03125, %v77_v17 }
 0x12f   :  { %v83_v19 = vadd.f32 1e-12, %v81_v18 }
 0x130   :  { %v80_v20 = vpop.xlane.xlu1 %79 }
 0x131   :  { %2516 = vrsqrt.f32 %v83_v19  ;;  %v82_v21 = vmul.f32 0.03125, %v80_v20 }
 0x133   :  { %v84_v22 = vadd.f32 1e-12, %v82_v21 }
 0x135   :  { %2518 = vrsqrt.f32 %v84_v22 }
 0x13b   :  { %v2517_v23 = vpop.eup %2516 }
 0x13c   :  { %v87_v24 = vmul.f32 %v2517_v23, %v71_v6 }
 0x13e   :  { %v95_v28 = vmul.f32 %v2060_v25, %v87_v24 }
 0x13f   :  { %v2519_v26 = vpop.eup %2518 }
 0x140   :  { %v88_v27 = vmul.f32 %v2519_v26, %v72_v10  ;;  %v2759_v31 = vadd.f32 %v2061_v29, %v95_v28 }
 0x142   :  { %v96_v30 = vmul.f32 %v2060_v25, %v88_v27 }
 0x144   :  { %v2761_v32 = vadd.f32 %v2061_v29, %v96_v30 }
 0x146   :  { %v105_v33 = vpack.c.bf16 %v2761_v32, %v2759_v31 }
 0x148   :  { %2237 = vmatmul.mubr.msk.bf16.vlgmr.msra.gmra.mrb[0].mxu1 %vm61_vm0, %v105_v33 }
 0x149   :  { %2242 = vmatprep.mubr.msk.bf16.mxu1 %vm2633_vm1, %v2632_v15 }
 0x21b   :  { %v166_v35 = vpop.f32.mrb[0].mxu1 }
 0x21c   :  { %v2238_v36 = vpop.f32.mrb[1].mxu1  ;;  %v167_v38 = vadd.f32 %v2062_v34, %v166_v35 }
 0x21d   :  { %v169_v37 = vpop.f32.mrb[2].mxu1 }
 0x21e   :  { %v170_v39 = vadd.f32 %v2062_v34, %v169_v37  ;;  %v2239_v40 = vpop.f32.mrb[3].mxu1 }
 0x220   :  { %v2433_v41 = vpack.i.bf16 %v170_v39, %v167_v38  ;;  %v2771_v42 = vpack.c.bf16 %v170_v39, %v167_v38 }
 0x222   :  { %2434 = vrot.lane.b32.xlu1 %v2433_v41, %s2634_s3  ;;  %2429 = vrot.lane.b32.xlu0 %v2433_v41, %s2635_s20 }
 0x226   :  { %2439 = vrot.lane.b32.xlu1 %v2433_v41, %s2636_s21 }
 0x22a   :  { %198 = vrot.lane.b32.xlu1 %v2771_v42, %s2637_s22 }
 0x294   :  { %v2435_v43 = vpop.permute.xlu1 %2434  ;;  %v2430_v44 = vpop.permute.xlu0 %2429 }
 0x295   :  { %v2437_v45 = vunpack.i.h.bf16 %v2435_v43  ;;  %v2436_v46 = vunpack.i.l.bf16 %v2435_v43  ;;  %v2432_v47 = vunpack.i.h.bf16 %v2430_v44  ;;  %v2431_v48 = vunpack.i.l.bf16 %v2430_v44 }
 0x297   :  { %v2778_v49 = vpack.c.bf16 %v2437_v45, %v2436_v46  ;;  %v2780_v50 = vpack.c.bf16 %v2432_v47, %v2431_v48 }
 0x298   :  { %v2440_v51 = vpop.permute.xlu1 %2439 }
 0x299   :  { %v2442_v52 = vunpack.i.h.bf16 %v2440_v51  ;;  %v2441_v53 = vunpack.i.l.bf16 %v2440_v51  ;;  %249 = vrot.lane.b32.xlu0 %v2780_v50, %s2637_s22  ;;  %299 = vrot.lane.b32.xlu1 %v2778_v49, %s2637_s22 }
 0x29b   :  { %v2786_v54 = vpack.c.bf16 %v2442_v52, %v2441_v53 }
 0x29c   :  { %v199_v55 = vpop.permute.xlu1 %198 }
 0x29d   :  { %v205_v56 = vsel %vm200_vm2, %v199_v55, 0  ;;  %349 = vrot.lane.b32.xlu0 %v2786_v54, %s2637_s22 }
 0x29e   :  { %2241 = vmatpush3.bf16.xpose.msra.mxu1 %v205_v56 }
 0x29f   :  { %2246 = vmatprep.subr.bf16.mxu1 %v2632_v15 }
 0x2a5   :  { %2243 = vmatmul.mubr.msk.bf16.vlgmr.msra.gmra.mrb[4].mxu1 %vm200_vm2, %v2771_v42 }
 0x2a6   :  { %2248 = vmatprep.mubr.msk.bf16.mxu1 %vm2633_vm1, %v2632_v15 }
 0x30b   :  { %v250_v57 = vpop.permute.xlu0 %249  ;;  %v300_v61 = vpop.permute.xlu1 %299 }
 0x30c   :  { %v255_v58 = vsel %vm200_vm2, %v250_v57, 0  ;;  %v305_v62 = vsel %vm200_vm2, %v300_v61, 0 }
 0x30d   :  { %2247 = vmatpush3.bf16.xpose.msra.mxu1 %v255_v58 }
 0x30e   :  { %2252 = vmatprep.subr.bf16.mxu1 %v2632_v15 }
 0x30f   :  { %v350_v59 = vpop.permute.xlu0 %349 }
 0x310   :  { %v355_v60 = vsel %vm200_vm2, %v350_v59, 0 }
 0x311   :  { %2259 = vmatpush3.bf16.xpose.msra.mxu0 %v355_v60 }
 0x312   :  { %2270 = vmatprep.subr.bf16.mxu0 %v2632_v15 }
 0x314   :  { %2249 = vmatmul.mubr.msk.bf16.vlgmr.msra.gmra.mrb[8].mxu1 %vm200_vm2, %v2780_v50 }
 0x315   :  { %2253 = vmatpush3.bf16.xpose.msra.mxu1 %v305_v62  ;;  %2254 = vmatprep.mubr.msk.bf16.mxu1 %vm2633_vm1, %v2632_v15 }
 0x316   :  { %2264 = vmatprep.subr.bf16.mxu1 %v2632_v15 }
 0x318   :  { %2261 = vmatmul.mubr.msk.bf16.vlgmr.msra.gmra.mrb[0].mxu0 %vm200_vm2, %v2786_v54 }
 0x319   :  { %2272 = vmatprep.mubr.msk.bf16.mxu0 %vm2633_vm1, %v2632_v15 }
 0x31c   :  { %2255 = vmatmul.mubr.msk.bf16.vlgmr.msra.gmra.mrb[12].mxu1 %vm200_vm2, %v2778_v49 }
 0x31d   :  { %2266 = vmatprep.mubr.msk.bf16.mxu1 %vm2633_vm1, %v2632_v15 }
 0x378   :  { %v241_v0 = vpop.f32.mrb[4].mxu1 }
 0x379   :  { %v242_v2 = vadd.f32 %v241_v0, %v2817_v63  ;;  %v2244_v3 = vpop.f32.mrb[5].mxu1 }
 0x37a   :  { %v244_v4 = vpop.f32.mrb[6].mxu1 }
 0x37b   :  { %v245_v5 = vadd.f32 %v244_v4, %v2822_v1  ;;  %v2245_v6 = vpop.f32.mrb[7].mxu1  ;;  %v399_v7 = vsel %vm398_vm3, %v242_v2, -inf }
 0x37c   :  { %400 = vmax.xlane.f32.xlu1 %v399_v7 }
 0x37d   :  { %v402_v8 = vsel %vm398_vm3, %v245_v5, -inf }
 0x37e   :  { %403 = vmax.xlane.f32.xlu0 %v402_v8 }
 0x3e7   :  { %v291_v9 = vpop.f32.mrb[8].mxu1 }
 0x3e8   :  { %v292_v10 = vadd.f32 %v291_v9, %v2817_v63  ;;  %v2250_v11 = vpop.f32.mrb[9].mxu1 }
 0x3e9   :  { %v294_v12 = vpop.f32.mrb[10].mxu1 }
 0x3ea   :  { %v295_v13 = vadd.f32 %v294_v12, %v2822_v1  ;;  %v2251_v14 = vpop.f32.mrb[11].mxu1  ;;  %v405_v16 = vsel %vm398_vm3, %v292_v10, -inf }
 0x3eb   :  { %v391_v17 = vpop.f32.mrb[0].mxu0  ;;  %406 = vmax.xlane.f32.xlu0 %v405_v16 }
 0x3ec   :  { %v2262_v18 = vpop.f32.mrb[1].mxu0  ;;  %v408_v21 = vsel %vm398_vm3, %v295_v13, -inf  ;;  %v392_v26 = vadd.f32 %v391_v17, %v2817_v63 }
 0x3ed   :  { %v394_v19 = vpop.f32.mrb[2].mxu0 }
 0x3ee   :  { %v2263_v20 = vpop.f32.mrb[3].mxu0  ;;  %v395_v30 = vadd.f32 %v394_v19, %v2822_v1  ;;  %v417_v34 = vsel %vm398_vm3, %v392_v26, -inf }
 0x3ef   :  { %v341_v22 = vpop.f32.mrb[12].mxu1  ;;  %409 = vmax.xlane.f32.xlu0 %v408_v21 }
 0x3f0   :  { %v342_v23 = vadd.f32 %v341_v22, %v2817_v63  ;;  %v2256_v24 = vpop.f32.mrb[13].mxu1  ;;  %v420_v35 = vsel %vm398_vm3, %v395_v30, -inf }
 0x3f1   :  { %v344_v25 = vpop.f32.mrb[14].mxu1 }
 0x3f2   :  { %v345_v27 = vadd.f32 %v344_v25, %v2822_v1  ;;  %v2257_v28 = vpop.f32.mrb[15].mxu1  ;;  %v411_v29 = vsel %vm398_vm3, %v342_v23, -inf }
 0x3f3   :  { %412 = vmax.xlane.f32.xlu1 %v411_v29 }
 0x3f4   :  { %v414_v33 = vsel %vm398_vm3, %v345_v27, -inf }
 0x3f5   :  { %415 = vmax.xlane.f32.xlu0 %v414_v33 }
 0x3f7   :  { %418 = vmax.xlane.f32.xlu1 %v417_v34 }
 0x3f9   :  { %421 = vmax.xlane.f32.xlu0 %v420_v35 }
 0x408   :  { %491 = vrot.lane.b32.xlu1 %v2771_v42, %s2638_s1 }
 0x409   :  { %v401_v39 = vpop.xlane.xlu1 %400 }
 0x40a   :  { %v423_v40 = vsub.f32 %v242_v2, %v401_v39 }
 0x40b   :  { %v404_v36 = vpop.xlane.xlu0 %403 }
 0x40c   :  { %v424_v37 = vsub.f32 %v245_v5, %v404_v36  ;;  %v431_v43 = vmul.f32 1.442695, %v423_v40 }
 0x40e   :  { %v433_v38 = vmul.f32 1.442695, %v424_v37 }
 0x410   :  { %2520 = vpow2.f32 %v433_v38 }
 0x411   :  { %2522 = vpow2.f32 %v431_v43 }
 0x41a   :  { %v2521_v41 = vpop.eup %2520 }
 0x41b   :  { %v450_v44 = vsel %vm398_vm3, %v2521_v41, 0.0  ;;  %v2523_v45 = vpop.eup %2522 }
 0x41c   :  { %451 = vadd.xlane.f32.xlu0 %v450_v44  ;;  %v447_v46 = vsel %vm398_vm3, %v2523_v45, 0.0 }
 0x42c   :  { %448 = vadd.xlane.f32.xlu1 %v447_v46 }
 0x478   :  { %v407_v47 = vpop.xlane.xlu0 %406 }
 0x479   :  { %v425_v48 = vsub.f32 %v292_v10, %v407_v47 }
 0x47b   :  { %v435_v51 = vmul.f32 1.442695, %v425_v48 }
 0x47c   :  { %v410_v42 = vpop.xlane.xlu0 %409 }
 0x47d   :  { %2524 = vpow2.f32 %v435_v51  ;;  %v426_v52 = vsub.f32 %v295_v13, %v410_v42 }
 0x47f   :  { %v437_v53 = vmul.f32 1.442695, %v426_v52 }
 0x480   :  { %v413_v55 = vpop.xlane.xlu1 %412 }
 0x481   :  { %2526 = vpow2.f32 %v437_v53  ;;  %v427_v56 = vsub.f32 %v342_v23, %v413_v55 }
 0x482   :  { %v416_v57 = vpop.xlane.xlu0 %415 }
 0x483   :  { %v428_v59 = vsub.f32 %v345_v27, %v416_v57  ;;  %v439_v61 = vmul.f32 1.442695, %v427_v56  ;;  %v2490_v56 = vld [vmem:[%s3206_s6] sm:$0xff]  }
 0x484   :  { %v419_v58 = vpop.xlane.xlu1 %418 }
 0x485   :  { %v429_v60 = vsub.f32 %v392_v26, %v419_v58  ;;  %v441_v6 = vmul.f32 1.442695, %v428_v59  ;;  %v2491_v59 = vld [vmem:[%s3206_s6 + $0x8] sm:$0xff]  }
 0x486   :  { %v422_v62 = vpop.xlane.xlu0 %421 }
 0x487   :  { %v2525_v0 = vpop.eup %2524  ;;  %v443_v2 = vmul.f32 1.442695, %v429_v60  ;;  %v430_v3 = vsub.f32 %v395_v30, %v422_v62 }
 0x488   :  { %v492_v4 = vpop.permute.xlu1 %491  ;;  %v453_v5 = vsel %vm398_vm3, %v2525_v0, 0.0 }
 0x489   :  { %2528 = vpow2.f32 %v443_v2  ;;  %v445_v7 = vmul.f32 1.442695, %v430_v3  ;;  %454 = vadd.xlane.f32.xlu1 %v453_v5  ;;  %2265 = vmatpush3.bf16.msra.mxu1 %v492_v4 }
 0x48a   :  { %2530 = vpow2.f32 %v439_v61  ;;  %2276 = vmatprep.subr.bf16.mxu1 %v2632_v15 }
 0x48b   :  { %v2527_v8 = vpop.eup %2526  ;;  %2532 = vpow2.f32 %v445_v7 }
 0x48c   :  { %v456_v9 = vsel %vm398_vm3, %v2527_v8, 0.0  ;;  %2534 = vpow2.f32 %v441_v6 }
 0x48d   :  { %457 = vadd.xlane.f32.xlu0 %v456_v9 }
 0x493   :  { %v2529_v10 = vpop.eup %2528 }
 0x494   :  { %v2531_v11 = vpop.eup %2530  ;;  %v465_v12 = vsel %vm398_vm3, %v2529_v10, 0.0 }
 0x495   :  { %v2533_v13 = vpop.eup %2532  ;;  %466 = vadd.xlane.f32.xlu1 %v465_v12  ;;  %v459_v17 = vsel %vm398_vm3, %v2531_v11, 0.0 }
 0x496   :  { %v468_v14 = vsel %vm398_vm3, %v2533_v13, 0.0  ;;  %v2535_v16 = vpop.eup %2534 }
 0x497   :  { %469 = vadd.xlane.f32.xlu0 %v468_v14  ;;  %v462_v18 = vsel %vm398_vm3, %v2535_v16, 0.0 }
 0x499   :  { %460 = vadd.xlane.f32.xlu1 %v459_v17 }
 0x49b   :  { %463 = vadd.xlane.f32.xlu0 %v462_v18 }
 0x4a9   :  { %v452_v19 = vpop.xlane.xlu0 %451 }
 0x4aa   :  { %585 = vrot.lane.b32.xlu1 %v2778_v49, %s2638_s1  ;;  %2536 = vrcp.f32 %v452_v19 }
 0x4ae   :  { %632 = vrot.lane.b32.xlu1 %v2786_v54, %s2638_s1 }
 0x4b1   :  { %538 = vrot.lane.b32.xlu0 %v2780_v50, %s2638_s1 }
 0x4b4   :  { %v2537_v21 = vpop.eup %2536 }
 0x4b5   :  { %v480_v23 = vmul.f32 %v2537_v21, %v2521_v41 }
 0x4b9   :  { %v449_v20 = vpop.xlane.xlu1 %448 }
 0x4ba   :  { %2538 = vrcp.f32 %v449_v20 }
 0x4c4   :  { %v2539_v22 = vpop.eup %2538 }
 0x4c5   :  { %v479_v24 = vmul.f32 %v2539_v22, %v2523_v45 }
 0x4c7   :  { %v487_v25 = vpack.c.bf16 %v480_v23, %v479_v24 }
 0x4c9   :  { %2267 = vmatmul.mubr.msk.bf16.vlgmr.msra.gmra.mrb[16].mxu1 %vm398_vm3, %v487_v25 }
 0x4ca   :  { %2278 = vmatprep.mubr.msk.bf16.mxu1 %vm2633_vm1, %v2632_v15 }
 0x516   :  { %v455_v26 = vpop.xlane.xlu1 %454 }
 0x51a   :  { %v458_v49 = vpop.xlane.xlu0 %457 }
 0x51b   :  { %2540 = vrcp.f32 %v458_v49 }
 0x51c   :  { %2542 = vrcp.f32 %v455_v26 }
 0x522   :  { %v467_v54 = vpop.xlane.xlu1 %466 }
 0x524   :  { %v470_v50 = vpop.xlane.xlu0 %469 }
 0x525   :  { %2544 = vrcp.f32 %v470_v50  ;;  %v2541_v28 = vpop.eup %2540 }
 0x526   :  { %2546 = vrcp.f32 %v467_v54  ;;  %v461_v27 = vpop.xlane.xlu1 %460  ;;  %v2543_v30 = vpop.eup %2542  ;;  %v482_v33 = vmul.f32 %v2541_v28, %v2527_v8  ;;  %v2074_v54 = vld [vmem:[%s3207_s7] ss:$0 sm:$0xff] }
 0x527   :  { %2548 = vrcp.f32 %v461_v27  ;;  %v481_v35 = vmul.f32 %v2543_v30, %v2525_v0 }
 0x528   :  { %v464_v29 = vpop.xlane.xlu0 %463 }
 0x529   :  { %2550 = vrcp.f32 %v464_v29  ;;  %v488_v37 = vpack.c.bf16 %v482_v33, %v481_v35 }
 0x52a   :  { %v586_v34 = vpop.permute.xlu1 %585 }
 0x52b   :  { %2277 = vmatpush3.bf16.msra.mxu1 %v586_v34 }
 0x52c   :  { %v539_v36 = vpop.permute.xlu0 %538  ;;  %2288 = vmatprep.subr.bf16.mxu1 %v2632_v15 }
 0x52d   :  { %2271 = vmatpush3.bf16.msra.mxu0 %v539_v36 }
 0x52e   :  { %2282 = vmatprep.subr.bf16.mxu0 %v2632_v15  ;;  %v633_v40 = vpop.permute.xlu1 %632 }
 0x52f   :  { %v2545_v38 = vpop.eup %2544 }
 0x530   :  { %v2547_v39 = vpop.eup %2546  ;;  %2273 = vmatmul.mubr.msk.bf16.vlgmr.msra.gmra.mrb[4].mxu0 %vm398_vm3, %v488_v37  ;;  %v486_v43 = vmul.f32 %v2545_v38, %v2533_v13 }
 0x531   :  { %v2549_v41 = vpop.eup %2548  ;;  %2283 = vmatpush3.bf16.msra.mxu0 %v633_v40  ;;  %2284 = vmatprep.mubr.msk.bf16.mxu0 %vm2633_vm1, %v2632_v15  ;;  %v485_v45 = vmul.f32 %v2547_v39, %v2529_v10 }
 0x532   :  { %2296 = vmatprep.subr.bf16.mxu0 %v2632_v15  ;;  %v483_v46 = vmul.f32 %v2549_v41, %v2531_v11 }
 0x533   :  { %v2551_v44 = vpop.eup %2550  ;;  %v490_v51 = vpack.c.bf16 %v486_v43, %v485_v45 }
 0x534   :  { %v484_v47 = vmul.f32 %v2551_v44, %v2535_v16 }
 0x536   :  { %v489_v48 = vpack.c.bf16 %v484_v47, %v483_v46 }
 0x538   :  { %2279 = vmatmul.mubr.msk.bf16.vlgmr.msra.gmra.mrb[20].mxu1 %vm398_vm3, %v489_v48  ;;  %2285 = vmatmul.mubr.msk.bf16.vlgmr.msra.gmra.mrb[8].mxu0 %vm398_vm3, %v490_v51  ;;  %v2493_v48 = vld [vmem:[%s3210_s10 + $0x8] sm:$0xff]  }
 0x539   :  { %2292 = vmatprep.mubr.msk.bf16.mxu1 %vm2633_vm1, %v2632_v15  ;;  %2300 = vmatprep.mubr.msk.bf16.mxu0 %vm2633_vm1, %v2632_v15 }
 0x53a   :  { %2289 = vmatpush3.bf16.msra.mxu1 %v2490_v56 }
 0x53b   :  { %2290 = vmatprep.subr.bf16.mxu1 %v2632_v15 }
 0x53e   :  { %2291 = vmatpush3.bf16.msra.mxu1 %v2491_v59  ;;  %v2078_v59 = vld [vmem:[%s3208_s8] ss:$0 sm:$0xff] }
 0x53f   :  { %2304 = vmatprep.subr.bf16.mxu1 %v2632_v15 }
 0x59c   :  { %v531_v42 = vpop.f32.mrb[16].mxu1 }
 0x59d   :  { %v2268_v52 = vpop.f32.mrb[17].mxu1 }
 0x59e   :  { %v534_v53 = vpop.f32.mrb[18].mxu1 }
 0x59f   :  { %v2269_v55 = vpop.f32.mrb[19].mxu1 }
 0x603   :  { %v578_v57 = vpop.f32.mrb[4].mxu0 }
 0x604   :  { %v2274_v58 = vpop.f32.mrb[5].mxu0 }
 0x605   :  { %v581_v60 = vpop.f32.mrb[6].mxu0 }
 0x606   :  { %v2443_v61 = vpack.i.bf16 %v581_v60, %v578_v57  ;;  %v2275_v62 = vpop.f32.mrb[7].mxu0 }
 0x608   :  { %2444 = vrot.lane.b32.xlu1 %v2443_v61, %s2639_s0 }
 0x60b   :  { %v625_v0 = vpop.f32.mrb[20].mxu1  ;;  %v672_v2 = vpop.f32.mrb[8].mxu0 }
 0x60c   :  { %v2280_v3 = vpop.f32.mrb[21].mxu1  ;;  %v2286_v4 = vpop.f32.mrb[9].mxu0 }
 0x60d   :  { %v628_v5 = vpop.f32.mrb[22].mxu1  ;;  %v675_v6 = vpop.f32.mrb[10].mxu0 }
 0x60e   :  { %v2448_v7 = vpack.i.bf16 %v628_v5, %v625_v0  ;;  %v2453_v8 = vpack.i.bf16 %v675_v6, %v672_v2  ;;  %v2281_v9 = vpop.f32.mrb[23].mxu1  ;;  %v2287_v10 = vpop.f32.mrb[11].mxu0  ;;  %v2079_v0 = vld [vmem:[%s3209_s9] ss:$0 sm:$0xff] }
 0x60f   :  { %v2494_v6 = vld [vmem:[%s3212_s12] sm:$0xff]   ;;  %v2497_v9 = vld [vmem:[%s3212_s12 + $0x18] sm:$0xff]  }
 0x610   :  { %2449 = vrot.lane.b32.xlu0 %v2448_v7, %s2640_s17  ;;  %2454 = vrot.lane.b32.xlu1 %v2453_v8, %s2641_s18  ;;  %v2495_v7 = vld [vmem:[%s3212_s12 + $0x8] sm:$0xff]   ;;  %v2496_v8 = vld [vmem:[%s3212_s12 + $0x10] sm:$0xff]  }
 0x611   :  { %v2498_v10 = vld [vmem:[%s3212_s12 + $0x20] sm:$0xff]  }
 0x67a   :  { %v2445_v11 = vpop.permute.xlu1 %2444 }
 0x67b   :  { %v2447_v12 = vunpack.i.h.bf16 %v2445_v11  ;;  %v2446_v13 = vunpack.i.l.bf16 %v2445_v11  ;;  %v2499_v11 = vld [vmem:[%s3212_s12 + $0x28] sm:$0xff]  }
 0x67d   :  { %v704_v21 = vsel %vm200_vm2, %v534_v53, %v2447_v12  ;;  %v703_v22 = vsel %vm200_vm2, %v531_v42, %v2446_v13  ;;  %v2500_v12 = vld [vmem:[%s3212_s12 + $0x30] sm:$0xff]   ;;  %v2501_v13 = vld [vmem:[%s3212_s12 + $0x38] sm:$0xff]  }
 0x682   :  { %v2450_v14 = vpop.permute.xlu0 %2449  ;;  %v2455_v16 = vpop.permute.xlu1 %2454 }
 0x683   :  { %v2452_v17 = vunpack.i.h.bf16 %v2450_v14  ;;  %v2451_v18 = vunpack.i.l.bf16 %v2450_v14  ;;  %v2457_v19 = vunpack.i.h.bf16 %v2455_v16  ;;  %v2456_v20 = vunpack.i.l.bf16 %v2455_v16  ;;  %v2080_v14 = vld [vmem:[%s3211_s11] ss:$0 sm:$0xff] }
 0x685   :  { %v705_v23 = vsel %vm398_vm3, %v703_v22, %v2451_v18  ;;  %v706_v24 = vsel %vm398_vm3, %v704_v21, %v2452_v17 }
 0x686   :  { %v708_v25 = vsel %vm707_vm4, %v705_v23, %v2456_v20  ;;  %v709_v49 = vsel %vm707_vm4, %v706_v24, %v2457_v19 }
 0x687   :  { %v710_v26 = vpack.c.bf16 %v709_v49, %v708_v25 }
 0x689   :  { %2293 = vmatmul.mubr.msk.bf16.vlgmr.msra.gmra.mrb[24].mxu1 %vm61_vm0, %v710_v26 }
 0x68a   :  { %2320 = vmatprep.mubr.msk.bf16.mxu1 %vm2633_vm1, %v2632_v15  ;;  %2305 = vmatpush3.bf16.msra.mxu1 %v2494_v6 }
 0x68b   :  { %2306 = vmatprep.subr.bf16.mxu1 %v2632_v15 }
 0x68e   :  { %2307 = vmatpush3.bf16.msra.mxu1 %v2495_v7 }
 0x68f   :  { %2308 = vmatprep.subr.bf16.mxu1 %v2632_v15 }
 0x692   :  { %2309 = vmatpush3.bf16.msra.mxu1 %v2496_v8 }
 0x693   :  { %2310 = vmatprep.subr.bf16.mxu1 %v2632_v15 }
 0x696   :  { %2311 = vmatpush3.bf16.msra.mxu1 %v2497_v9  ;;  %v2093_v9 = vld [vmem:[%s3214_s14] ss:$0 sm:$0xff] }
 0x697   :  { %2312 = vmatprep.subr.bf16.mxu1 %v2632_v15 }
 0x69a   :  { %2313 = vmatpush3.bf16.msra.mxu1 %v2498_v10 }
 0x69b   :  { %2314 = vmatprep.subr.bf16.mxu1 %v2632_v15 }
 0x69e   :  { %2315 = vmatpush3.bf16.msra.mxu1 %v2499_v11 }
 0x69f   :  { %2316 = vmatprep.subr.bf16.mxu1 %v2632_v15 }
 0x6a2   :  { %2317 = vmatpush3.bf16.msra.mxu1 %v2500_v12 }
 0x6a3   :  { %2318 = vmatprep.subr.bf16.mxu1 %v2632_v15 }
 0x6a6   :  { %2319 = vmatpush3.bf16.msra.mxu1 %v2501_v13 }
 0x6a7   :  { %2350 = vmatprep.subr.bf16.mxu1 %v2632_v15 }
 0x75c   :  { %v771_v50 = vpop.f32.mrb[24].mxu1 }
 0x75d   :  { %v772_v27 = vadd.f32 %v2074_v54, %v771_v50  ;;  %v2294_v28 = vpop.f32.mrb[25].mxu1 }
 0x75e   :  { %v774_v29 = vpop.f32.mrb[26].mxu1 }
 0x75f   :  { %v775_v30 = vadd.f32 %v2074_v54, %v774_v29  ;;  %v2295_v33 = vpop.f32.mrb[27].mxu1  ;;  %v778_v34 = vadd.f32 %v772_v27, %v2759_v31 }
 0x761   :  { %v782_v35 = vsel %vm61_vm0, %v778_v34, 0.0  ;;  %v779_v36 = vadd.f32 %v775_v30, %v2761_v32  ;;  %v2492_v32 = vld [vmem:[%s3210_s10] sm:$0xff]  }
 0x762   :  { %783 = vadd.xlane.f32.xlu0 %v782_v35  ;;  %2297 = vmatpush3.bf16.msra.mxu0 %v2492_v32 }
 0x763   :  { %v785_v37 = vsel %vm61_vm0, %v779_v36, 0.0  ;;  %2298 = vmatprep.subr.bf16.mxu0 %v2632_v15 }
 0x764   :  { %786 = vadd.xlane.f32.xlu1 %v785_v37 }
 0x766   :  { %2299 = vmatpush3.bf16.msra.mxu0 %v2493_v48 }
 0x767   :  { %2324 = vmatprep.subr.bf16.mxu0 %v2632_v15 }
 0x7ef   :  { %v784_v38 = vpop.xlane.xlu0 %783 }
 0x7f0   :  { %v788_v39 = vmul.f32 0.03125, %v784_v38 }
 0x7f1   :  { %v787_v40 = vpop.xlane.xlu1 %786 }
 0x7f2   :  { %v790_v41 = vsub.f32 %v778_v34, %v788_v39  ;;  %v789_v43 = vmul.f32 0.03125, %v787_v40  ;;  %v2084_v40 = vld [vmem:[%s3213_s13] ss:$0 sm:$0xff] }
 0x7f4   :  { %v791_v44 = vsub.f32 %v779_v36, %v789_v43  ;;  %v792_v45 = vmul.f32 %v790_v41, %v790_v41 }
 0x7f6   :  { %v794_v46 = vsel %vm61_vm0, %v792_v45, 0.0  ;;  %v793_v47 = vmul.f32 %v791_v44, %v791_v44 }
 0x7f7   :  { %795 = vadd.xlane.f32.xlu0 %v794_v46 }
 0x7f8   :  { %v797_v31 = vsel %vm61_vm0, %v793_v47, 0.0 }
 0x7fb   :  { %798 = vadd.xlane.f32.xlu0 %v797_v31 }
 0x884   :  { %v796_v51 = vpop.xlane.xlu0 %795 }
 0x885   :  { %v800_v42 = vmul.f32 0.03125, %v796_v51 }
 0x887   :  { %v802_v52 = vadd.f32 1e-12, %v800_v42 }
 0x888   :  { %v799_v53 = vpop.xlane.xlu0 %798 }
 0x889   :  { %2552 = vrsqrt.f32 %v802_v52  ;;  %v801_v55 = vmul.f32 0.03125, %v799_v53 }
 0x88b   :  { %v803_v56 = vadd.f32 1e-12, %v801_v55 }
 0x88d   :  { %2554 = vrsqrt.f32 %v803_v56 }
 0x893   :  { %v2553_v57 = vpop.eup %2552 }
 0x894   :  { %v806_v58 = vmul.f32 %v2553_v57, %v790_v41 }
 0x896   :  { %v814_v61 = vmul.f32 %v2078_v59, %v806_v58 }
 0x897   :  { %v2555_v60 = vpop.eup %2554 }
 0x898   :  { %v807_v62 = vmul.f32 %v2555_v60, %v791_v44  ;;  %v2915_v3 = vadd.f32 %v2079_v0, %v814_v61 }
 0x89a   :  { %v815_v2 = vmul.f32 %v2078_v59, %v807_v62  ;;  %v2502_v62 = vld [vmem:[%s3204_s4 + $0x10] sm:$0xff]  }
 0x89c   :  { %v2917_v4 = vadd.f32 %v2079_v0, %v815_v2  ;;  %v2503_v0 = vld [vmem:[%s3204_s4 + $0x18] sm:$0xff]  }
 0x89e   :  { %v824_v5 = vpack.c.bf16 %v2917_v4, %v2915_v3 }
 0x8a0   :  { %2301 = vmatmul.mubr.msk.bf16.vlgmr.msra.gmra.mrb[12].mxu0 %vm61_vm0, %v824_v5 }
 0x8a1   :  { %2328 = vmatprep.mubr.msk.bf16.mxu0 %vm2633_vm1, %v2632_v15  ;;  %2325 = vmatpush3.bf16.msra.mxu0 %v2502_v62 }
 0x8a2   :  { %2326 = vmatprep.subr.bf16.mxu0 %v2632_v15 }
 0x8a5   :  { %2327 = vmatpush3.bf16.msra.mxu0 %v2503_v0 }
 0x8a6   :  { %2332 = vmatprep.subr.bf16.mxu0 %v2632_v15 }
 0x973   :  { %v885_v16 = vpop.f32.mrb[12].mxu0 }
 0x974   :  { %v886_v17 = vadd.f32 %v2080_v14, %v885_v16  ;;  %v2302_v18 = vpop.f32.mrb[13].mxu0 }
 0x975   :  { %v888_v19 = vpop.f32.mrb[14].mxu0 }
 0x976   :  { %v894_v20 = vmul.f32 0.044715, %v886_v17  ;;  %v889_v21 = vadd.f32 %v2080_v14, %v888_v19  ;;  %v2303_v22 = vpop.f32.mrb[15].mxu0  ;;  %v892_v34 = vmul.f32 0.5, %v886_v17  ;;  %v2094_v14 = vld [vmem:[%s3215_s15] ss:$0 sm:$0xff] }
 0x978   :  { %v896_v23 = vmul.f32 %v894_v20, %v886_v17  ;;  %v895_v24 = vmul.f32 0.044715, %v889_v21  ;;  %v893_v35 = vmul.f32 0.5, %v889_v21  ;;  %v2100_v20 = vld [vmem:[%s3205_s5 + $0x1] ss:$0 sm:$0xff] }
 0x97a   :  { %v898_v25 = vmul.f32 %v896_v23, %v886_v17  ;;  %v897_v49 = vmul.f32 %v895_v24, %v889_v21 }
 0x97c   :  { %v900_v26 = vadd.f32 %v898_v25, %v886_v17  ;;  %v899_v54 = vmul.f32 %v897_v49, %v889_v21 }
 0x97e   :  { %v902_v50 = vmul.f32 0.7978846, %v900_v26  ;;  %v901_v27 = vadd.f32 %v899_v54, %v889_v21 }
 0x980   :  { %2556 = vtanh.f32 %v902_v50  ;;  %v903_v28 = vmul.f32 0.7978846, %v901_v27 }
 0x982   :  { %2558 = vtanh.f32 %v903_v28 }
 0x98a   :  { %v2557_v29 = vpop.eup %2556 }
 0x98b   :  { %v906_v30 = vadd.f32 1.0, %v2557_v29 }
 0x98c   :  { %v2559_v33 = vpop.eup %2558 }
 0x98d   :  { %v907_v36 = vadd.f32 1.0, %v2559_v33  ;;  %v908_v37 = vmul.f32 %v906_v30, %v892_v34 }
 0x98f   :  { %v909_v38 = vmul.f32 %v907_v36, %v893_v35 }
 0x991   :  { %v910_v39 = vpack.c.bf16 %v909_v38, %v908_v37 }
 0x993   :  { %2321 = vmatmul.mubr.bf16.vlgmr.msra.gmra.mrb[28].mxu1 %v910_v39 }
 0x994   :  { %2352 = vmatprep.mubr.msk.bf16.mxu1 %vm2633_vm1, %v2632_v15 }
 0xa66   :  { %v1016_v41 = vpop.f32.mrb[28].mxu1 }
 0xa67   :  { %v1017_v43 = vadd.f32 %v2084_v40, %v1016_v41  ;;  %v2322_v44 = vpop.f32.mrb[29].mxu1 }
 0xa68   :  { %v1019_v45 = vpop.f32.mrb[30].mxu1 }
 0xa69   :  { %v1020_v46 = vadd.f32 %v2084_v40, %v1019_v45  ;;  %v2323_v47 = vpop.f32.mrb[31].mxu1  ;;  %v1023_v31 = vadd.f32 %v1017_v43, %v2915_v3 }
 0xa6b   :  { %v1027_v32 = vsel %vm61_vm0, %v1023_v31, 0.0  ;;  %v1024_v48 = vadd.f32 %v1020_v46, %v2917_v4 }
 0xa6c   :  { %1028 = vadd.xlane.f32.xlu0 %v1027_v32 }
 0xa6d   :  { %v1030_v51 = vsel %vm61_vm0, %v1024_v48, 0.0 }
 0xa6e   :  { %1031 = vadd.xlane.f32.xlu1 %v1030_v51 }
 0xaf9   :  { %v1029_v42 = vpop.xlane.xlu0 %1028 }
 0xafa   :  { %v1033_v52 = vmul.f32 0.03125, %v1029_v42 }
 0xafb   :  { %v1032_v53 = vpop.xlane.xlu1 %1031 }
 0xafc   :  { %v1035_v55 = vsub.f32 %v1023_v31, %v1033_v52  ;;  %v1034_v56 = vmul.f32 0.03125, %v1032_v53 }
 0xafe   :  { %v1036_v57 = vsub.f32 %v1024_v48, %v1034_v56  ;;  %v1037_v58 = vmul.f32 %v1035_v55, %v1035_v55 }
 0xb00   :  { %v1039_v59 = vsel %vm61_vm0, %v1037_v58, 0.0  ;;  %v1038_v60 = vmul.f32 %v1036_v57, %v1036_v57 }
 0xb01   :  { %1040 = vadd.xlane.f32.xlu0 %v1039_v59 }
 0xb02   :  { %v1042_v61 = vsel %vm61_vm0, %v1038_v60, 0.0 }
 0xb03   :  { %1043 = vadd.xlane.f32.xlu1 %v1042_v61 }
 0xb8e   :  { %v1041_v2 = vpop.xlane.xlu0 %1040 }
 0xb8f   :  { %v1045_v3 = vmul.f32 0.03125, %v1041_v2 }
 0xb90   :  { %v1044_v4 = vpop.xlane.xlu1 %1043 }
 0xb91   :  { %v1047_v5 = vadd.f32 1e-12, %v1045_v3  ;;  %v1046_v6 = vmul.f32 0.03125, %v1044_v4 }
 0xb93   :  { %2560 = vrsqrt.f32 %v1047_v5  ;;  %v1048_v7 = vadd.f32 1e-12, %v1046_v6 }
 0xb95   :  { %2562 = vrsqrt.f32 %v1048_v7 }
 0xb9d   :  { %v2561_v8 = vpop.eup %2560 }
 0xb9e   :  { %v1051_v10 = vmul.f32 %v2561_v8, %v1035_v55 }
 0xb9f   :  { %v2563_v11 = vpop.eup %2562 }
 0xba0   :  { %v1059_v12 = vmul.f32 %v2093_v9, %v1051_v10  ;;  %v1052_v13 = vmul.f32 %v2563_v11, %v1036_v57 }
 0xba2   :  { %v1060_v16 = vmul.f32 %v2093_v9, %v1052_v13  ;;  %v2984_v17 = vadd.f32 %v2094_v14, %v1059_v12 }
 0xba4   :  { %v2986_v18 = vadd.f32 %v2094_v14, %v1060_v16 }
 0xba6   :  { %v1069_v19 = vpack.c.bf16 %v2986_v18, %v2984_v17 }
 0xba8   :  { %2329 = vmatmul.mubr.msk.bf16.vlgmr.msra.gmra.mrb[16].mxu0 %vm61_vm0, %v1069_v19 }
 0xba9   :  { %2334 = vmatprep.mubr.msk.bf16.mxu0 %vm2633_vm1, %v2632_v15 }
 0xc7b   :  { %v1132_v21 = vpop.f32.mrb[16].mxu0 }
 0xc7c   :  { %v2330_v22 = vpop.f32.mrb[17].mxu0  ;;  %v1133_v24 = vadd.f32 %v2100_v20, %v1132_v21 }
 0xc7d   :  { %v1135_v23 = vpop.f32.mrb[18].mxu0 }
 0xc7e   :  { %v1136_v25 = vadd.f32 %v2100_v20, %v1135_v23  ;;  %v2331_v49 = vpop.f32.mrb[19].mxu0 }
 0xc80   :  { %v2463_v26 = vpack.i.bf16 %v1136_v25, %v1133_v24  ;;  %v2996_v54 = vpack.c.bf16 %v1136_v25, %v1133_v24 }
 0xc82   :  { %2464 = vrot.lane.b32.xlu1 %v2463_v26, %s2634_s3  ;;  %2459 = vrot.lane.b32.xlu0 %v2463_v26, %s2635_s20 }
 0xc86   :  { %2469 = vrot.lane.b32.xlu1 %v2463_v26, %s2636_s21 }
 0xc8a   :  { %1164 = vrot.lane.b32.xlu1 %v2996_v54, %s2637_s22 }
 0xcf4   :  { %v2465_v50 = vpop.permute.xlu1 %2464  ;;  %v2460_v27 = vpop.permute.xlu0 %2459 }
 0xcf5   :  { %v2467_v28 = vunpack.i.h.bf16 %v2465_v50  ;;  %v2466_v29 = vunpack.i.l.bf16 %v2465_v50  ;;  %v2462_v30 = vunpack.i.h.bf16 %v2460_v27  ;;  %v2461_v33 = vunpack.i.l.bf16 %v2460_v27 }
 0xcf7   :  { %v3003_v34 = vpack.c.bf16 %v2467_v28, %v2466_v29  ;;  %v3005_v35 = vpack.c.bf16 %v2462_v30, %v2461_v33 }
 0xcf8   :  { %v2470_v36 = vpop.permute.xlu1 %2469 }
 0xcf9   :  { %v2472_v37 = vunpack.i.h.bf16 %v2470_v36  ;;  %v2471_v38 = vunpack.i.l.bf16 %v2470_v36  ;;  %1214 = vrot.lane.b32.xlu0 %v3005_v35, %s2637_s22  ;;  %1264 = vrot.lane.b32.xlu1 %v3003_v34, %s2637_s22 }
 0xcfb   :  { %v3011_v39 = vpack.c.bf16 %v2472_v37, %v2471_v38 }
 0xcfc   :  { %v1165_v40 = vpop.permute.xlu1 %1164 }
 0xcfd   :  { %v1170_v41 = vsel %vm200_vm2, %v1165_v40, 0  ;;  %1314 = vrot.lane.b32.xlu0 %v3011_v39, %s2637_s22 }
 0xcfe   :  { %2333 = vmatpush3.bf16.xpose.msra.mxu0 %v1170_v41 }
 0xcff   :  { %2338 = vmatprep.subr.bf16.mxu0 %v2632_v15 }
 0xd05   :  { %2335 = vmatmul.mubr.msk.bf16.vlgmr.msra.gmra.mrb[20].mxu0 %vm200_vm2, %v2996_v54 }
 0xd06   :  { %2340 = vmatprep.mubr.msk.bf16.mxu0 %vm2633_vm1, %v2632_v15 }
 0xd6b   :  { %v1215_v43 = vpop.permute.xlu0 %1214  ;;  %v1265_v47 = vpop.permute.xlu1 %1264 }
 0xd6c   :  { %v1220_v44 = vsel %vm200_vm2, %v1215_v43, 0  ;;  %v1270_v31 = vsel %vm200_vm2, %v1265_v47, 0 }
 0xd6d   :  { %2339 = vmatpush3.bf16.xpose.msra.mxu0 %v1220_v44 }
 0xd6e   :  { %2344 = vmatprep.subr.bf16.mxu0 %v2632_v15 }
 0xd6f   :  { %v1315_v45 = vpop.permute.xlu0 %1314 }
 0xd70   :  { %v1320_v46 = vsel %vm200_vm2, %v1315_v45, 0 }
 0xd71   :  { %2351 = vmatpush3.bf16.xpose.msra.mxu1 %v1320_v46 }
 0xd72   :  { %2362 = vmatprep.subr.bf16.mxu1 %v2632_v15 }
 0xd74   :  { %2341 = vmatmul.mubr.msk.bf16.vlgmr.msra.gmra.mrb[24].mxu0 %vm200_vm2, %v3005_v35 }
 0xd75   :  { %2345 = vmatpush3.bf16.xpose.msra.mxu0 %v1270_v31  ;;  %2346 = vmatprep.mubr.msk.bf16.mxu0 %vm2633_vm1, %v2632_v15 }
 0xd76   :  { %2356 = vmatprep.subr.bf16.mxu0 %v2632_v15 }
 0xd78   :  { %2353 = vmatmul.mubr.msk.bf16.vlgmr.msra.gmra.mrb[32].mxu1 %vm200_vm2, %v3011_v39 }
 0xd79   :  { %2364 = vmatprep.mubr.msk.bf16.mxu1 %vm2633_vm1, %v2632_v15 }
 0xd7c   :  { %2347 = vmatmul.mubr.msk.bf16.vlgmr.msra.gmra.mrb[28].mxu0 %vm200_vm2, %v3003_v34 }
 0xd7d   :  { %2358 = vmatprep.mubr.msk.bf16.mxu0 %vm2633_vm1, %v2632_v15 }
 0xdd8   :  { %v1206_v32 = vpop.f32.mrb[20].mxu0 }
 0xdd9   :  { %v1207_v48 = vadd.f32 %v1206_v32, %v2817_v63  ;;  %v2336_v51 = vpop.f32.mrb[21].mxu0 }
 0xdda   :  { %v1209_v42 = vpop.f32.mrb[22].mxu0 }
 0xddb   :  { %v1210_v52 = vadd.f32 %v1209_v42, %v2822_v1  ;;  %v2337_v53 = vpop.f32.mrb[23].mxu0  ;;  %v1363_v55 = vsel %vm398_vm3, %v1207_v48, -inf }
 0xddc   :  { %1364 = vmax.xlane.f32.xlu1 %v1363_v55 }
 0xddd   :  { %v1366_v56 = vsel %vm398_vm3, %v1210_v52, -inf }
 0xdde   :  { %1367 = vmax.xlane.f32.xlu0 %v1366_v56 }
 0xe47   :  { %v1256_v57 = vpop.f32.mrb[24].mxu0 }
 0xe48   :  { %v1257_v58 = vadd.f32 %v1256_v57, %v2817_v63  ;;  %v2342_v59 = vpop.f32.mrb[25].mxu0 }
 0xe49   :  { %v1259_v60 = vpop.f32.mrb[26].mxu0 }
 0xe4a   :  { %v1260_v61 = vadd.f32 %v1259_v60, %v2822_v1  ;;  %v2343_v62 = vpop.f32.mrb[27].mxu0  ;;  %v1369_v0 = vsel %vm398_vm3, %v1257_v58, -inf }
 0xe4b   :  { %1370 = vmax.xlane.f32.xlu0 %v1369_v0  ;;  %v1356_v2 = vpop.f32.mrb[32].mxu1 }
 0xe4c   :  { %v2354_v3 = vpop.f32.mrb[33].mxu1  ;;  %v1372_v6 = vsel %vm398_vm3, %v1260_v61, -inf  ;;  %v1357_v11 = vadd.f32 %v1356_v2, %v2817_v63 }
 0xe4d   :  { %v1359_v4 = vpop.f32.mrb[34].mxu1 }
 0xe4e   :  { %v2355_v5 = vpop.f32.mrb[35].mxu1  ;;  %v1360_v16 = vadd.f32 %v1359_v4, %v2822_v1  ;;  %v1381_v20 = vsel %vm398_vm3, %v1357_v11, -inf }
 0xe4f   :  { %1373 = vmax.xlane.f32.xlu0 %v1372_v6  ;;  %v1306_v7 = vpop.f32.mrb[28].mxu0 }
 0xe50   :  { %v1307_v8 = vadd.f32 %v1306_v7, %v2817_v63  ;;  %v2348_v9 = vpop.f32.mrb[29].mxu0  ;;  %v1384_v21 = vsel %vm398_vm3, %v1360_v16, -inf }
 0xe51   :  { %v1309_v10 = vpop.f32.mrb[30].mxu0 }
 0xe52   :  { %v1310_v12 = vadd.f32 %v1309_v10, %v2822_v1  ;;  %v2349_v13 = vpop.f32.mrb[31].mxu0  ;;  %v1375_v14 = vsel %vm398_vm3, %v1307_v8, -inf }
 0xe53   :  { %1376 = vmax.xlane.f32.xlu1 %v1375_v14 }
 0xe54   :  { %v1378_v19 = vsel %vm398_vm3, %v1310_v12, -inf }
 0xe55   :  { %1379 = vmax.xlane.f32.xlu0 %v1378_v19 }
 0xe57   :  { %1382 = vmax.xlane.f32.xlu1 %v1381_v20 }
 0xe59   :  { %1385 = vmax.xlane.f32.xlu0 %v1384_v21 }
 0xe68   :  { %1455 = vrot.lane.b32.xlu1 %v2996_v54, %s2638_s1 }
 0xe69   :  { %v1365_v24 = vpop.xlane.xlu1 %1364 }
 0xe6a   :  { %v1387_v25 = vsub.f32 %v1207_v48, %v1365_v24 }
 0xe6b   :  { %v1368_v63 = vpop.xlane.xlu0 %1367 }
 0xe6c   :  { %v1388_v22 = vsub.f32 %v1210_v52, %v1368_v63  ;;  %v1395_v1 = vmul.f32 1.442695, %v1387_v25 }
 0xe6e   :  { %v1397_v23 = vmul.f32 1.442695, %v1388_v22 }
 0xe70   :  { %2564 = vpow2.f32 %v1397_v23 }
 0xe71   :  { %2566 = vpow2.f32 %v1395_v1 }
 0xe7a   :  { %v2565_v49 = vpop.eup %2564 }
 0xe7b   :  { %v1414_v26 = vsel %vm398_vm3, %v2565_v49, 0.0  ;;  %v2567_v50 = vpop.eup %2566 }
 0xe7c   :  { %1415 = vadd.xlane.f32.xlu0 %v1414_v26  ;;  %v1411_v27 = vsel %vm398_vm3, %v2567_v50, 0.0 }
 0xe8c   :  { %1412 = vadd.xlane.f32.xlu1 %v1411_v27 }
 0xed8   :  { %v1371_v28 = vpop.xlane.xlu0 %1370 }
 0xed9   :  { %v1389_v29 = vsub.f32 %v1257_v58, %v1371_v28 }
 0xedb   :  { %v1399_v30 = vmul.f32 1.442695, %v1389_v29 }
 0xedc   :  { %v1374_v54 = vpop.xlane.xlu0 %1373 }
 0xedd   :  { %2568 = vpow2.f32 %v1399_v30  ;;  %v1390_v33 = vsub.f32 %v1260_v61, %v1374_v54 }
 0xedf   :  { %v1401_v36 = vmul.f32 1.442695, %v1390_v33 }
 0xee0   :  { %v1377_v37 = vpop.xlane.xlu1 %1376 }
 0xee1   :  { %2570 = vpow2.f32 %v1401_v36  ;;  %v1391_v38 = vsub.f32 %v1307_v8, %v1377_v37  ;;  %v2504_v36 = vld [vmem:[%s3206_s6 + $0x10] sm:$0xff]  }
 0xee2   :  { %v1380_v40 = vpop.xlane.xlu0 %1379 }
 0xee3   :  { %v1392_v43 = vsub.f32 %v1310_v12, %v1380_v40  ;;  %v1403_v45 = vmul.f32 1.442695, %v1391_v38  ;;  %v2505_v40 = vld [vmem:[%s3206_s6 + $0x18] sm:$0xff]  }
 0xee4   :  { %v1383_v41 = vpop.xlane.xlu1 %1382 }
 0xee5   :  { %v1393_v44 = vsub.f32 %v1357_v11, %v1383_v41  ;;  %v1405_v42 = vmul.f32 1.442695, %v1392_v43 }
 0xee6   :  { %v1386_v46 = vpop.xlane.xlu0 %1385 }
 0xee7   :  { %v2569_v47 = vpop.eup %2568  ;;  %v1407_v31 = vmul.f32 1.442695, %v1393_v44  ;;  %v1394_v32 = vsub.f32 %v1360_v16, %v1386_v46 }
 0xee8   :  { %v1456_v48 = vpop.permute.xlu1 %1455  ;;  %v1417_v51 = vsel %vm398_vm3, %v2569_v47, 0.0 }
 0xee9   :  { %2572 = vpow2.f32 %v1407_v31  ;;  %v1409_v52 = vmul.f32 1.442695, %v1394_v32  ;;  %1418 = vadd.xlane.f32.xlu1 %v1417_v51  ;;  %2357 = vmatpush3.bf16.msra.mxu0 %v1456_v48 }
 0xeea   :  { %2574 = vpow2.f32 %v1403_v45  ;;  %2368 = vmatprep.subr.bf16.mxu0 %v2632_v15 }
 0xeeb   :  { %v2571_v53 = vpop.eup %2570  ;;  %2576 = vpow2.f32 %v1409_v52 }
 0xeec   :  { %v1420_v55 = vsel %vm398_vm3, %v2571_v53, 0.0  ;;  %2578 = vpow2.f32 %v1405_v42 }
 0xeed   :  { %1421 = vadd.xlane.f32.xlu0 %v1420_v55 }
 0xef3   :  { %v2573_v56 = vpop.eup %2572 }
 0xef4   :  { %v2575_v57 = vpop.eup %2574  ;;  %v1429_v58 = vsel %vm398_vm3, %v2573_v56, 0.0 }
 0xef5   :  { %v2577_v59 = vpop.eup %2576  ;;  %1430 = vadd.xlane.f32.xlu1 %v1429_v58  ;;  %v1423_v62 = vsel %vm398_vm3, %v2575_v57, 0.0 }
 0xef6   :  { %v1432_v60 = vsel %vm398_vm3, %v2577_v59, 0.0  ;;  %v2579_v61 = vpop.eup %2578 }
 0xef7   :  { %1433 = vadd.xlane.f32.xlu0 %v1432_v60  ;;  %v1426_v0 = vsel %vm398_vm3, %v2579_v61, 0.0 }
 0xef9   :  { %1424 = vadd.xlane.f32.xlu1 %v1423_v62 }
 0xefb   :  { %1427 = vadd.xlane.f32.xlu0 %v1426_v0 }
 0xf09   :  { %v1416_v2 = vpop.xlane.xlu0 %1415 }
 0xf0a   :  { %1549 = vrot.lane.b32.xlu1 %v3003_v34, %s2638_s1  ;;  %2580 = vrcp.f32 %v1416_v2 }
 0xf0e   :  { %1596 = vrot.lane.b32.xlu1 %v3011_v39, %s2638_s1 }
 0xf11   :  { %1502 = vrot.lane.b32.xlu0 %v3005_v35, %s2638_s1 }
 0xf14   :  { %v2581_v4 = vpop.eup %2580 }
 0xf15   :  { %v1444_v6 = vmul.f32 %v2581_v4, %v2565_v49 }
 0xf19   :  { %v1413_v3 = vpop.xlane.xlu1 %1412 }
 0xf1a   :  { %2582 = vrcp.f32 %v1413_v3 }
 0xf24   :  { %v2583_v5 = vpop.eup %2582 }
 0xf25   :  { %v1443_v7 = vmul.f32 %v2583_v5, %v2567_v50 }
 0xf27   :  { %v1451_v8 = vpack.c.bf16 %v1444_v6, %v1443_v7 }
 0xf29   :  { %2359 = vmatmul.mubr.msk.bf16.vlgmr.msra.gmra.mrb[32].mxu0 %vm398_vm3, %v1451_v8 }
 0xf2a   :  { %2370 = vmatprep.mubr.msk.bf16.mxu0 %vm2633_vm1, %v2632_v15 }
 0xf76   :  { %v1419_v9 = vpop.xlane.xlu1 %1418 }
 0xf7a   :  { %v1422_v34 = vpop.xlane.xlu0 %1421 }
 0xf7b   :  { %2584 = vrcp.f32 %v1422_v34  ;;  %v2117_v34 = vld [vmem:[%s3207_s7 + $0x1] ss:$0 sm:$0xff] }
 0xf7c   :  { %2586 = vrcp.f32 %v1419_v9 }
 0xf82   :  { %v1431_v39 = vpop.xlane.xlu1 %1430 }
 0xf84   :  { %v1434_v35 = vpop.xlane.xlu0 %1433 }
 0xf85   :  { %2588 = vrcp.f32 %v1434_v35  ;;  %v2585_v11 = vpop.eup %2584 }
 0xf86   :  { %2590 = vrcp.f32 %v1431_v39  ;;  %v1425_v10 = vpop.xlane.xlu1 %1424  ;;  %v2587_v13 = vpop.eup %2586  ;;  %v1446_v14 = vmul.f32 %v2585_v11, %v2571_v53 }
 0xf87   :  { %2592 = vrcp.f32 %v1425_v10  ;;  %v1445_v19 = vmul.f32 %v2587_v13, %v2569_v47 }
 0xf88   :  { %v1428_v12 = vpop.xlane.xlu0 %1427 }
 0xf89   :  { %2594 = vrcp.f32 %v1428_v12  ;;  %v1452_v21 = vpack.c.bf16 %v1446_v14, %v1445_v19 }
 0xf8a   :  { %v1550_v16 = vpop.permute.xlu1 %1549 }
 0xf8b   :  { %2369 = vmatpush3.bf16.msra.mxu0 %v1550_v16 }
 0xf8c   :  { %v1503_v20 = vpop.permute.xlu0 %1502  ;;  %2380 = vmatprep.subr.bf16.mxu0 %v2632_v15 }
 0xf8d   :  { %2363 = vmatpush3.bf16.msra.mxu1 %v1503_v20 }
 0xf8e   :  { %2374 = vmatprep.subr.bf16.mxu1 %v2632_v15  ;;  %v1597_v23 = vpop.permute.xlu1 %1596 }
 0xf8f   :  { %v2589_v63 = vpop.eup %2588 }
 0xf90   :  { %v2591_v22 = vpop.eup %2590  ;;  %2365 = vmatmul.mubr.msk.bf16.vlgmr.msra.gmra.mrb[36].mxu1 %vm398_vm3, %v1452_v21  ;;  %v1450_v25 = vmul.f32 %v2589_v63, %v2577_v59 }
 0xf91   :  { %v2593_v24 = vpop.eup %2592  ;;  %2375 = vmatpush3.bf16.msra.mxu1 %v1597_v23  ;;  %2376 = vmatprep.mubr.msk.bf16.mxu1 %vm2633_vm1, %v2632_v15  ;;  %v1449_v1 = vmul.f32 %v2591_v22, %v2573_v56 }
 0xf92   :  { %2388 = vmatprep.subr.bf16.mxu1 %v2632_v15  ;;  %v1447_v26 = vmul.f32 %v2593_v24, %v2575_v57 }
 0xf93   :  { %v2595_v49 = vpop.eup %2594  ;;  %v1454_v28 = vpack.c.bf16 %v1450_v25, %v1449_v1 }
 0xf94   :  { %v1448_v50 = vmul.f32 %v2595_v49, %v2579_v61 }
 0xf96   :  { %v1453_v27 = vpack.c.bf16 %v1448_v50, %v1447_v26  ;;  %v2507_v26 = vld [vmem:[%s3210_s10 + $0x18] sm:$0xff]  }
 0xf98   :  { %2371 = vmatmul.mubr.msk.bf16.vlgmr.msra.gmra.mrb[36].mxu0 %vm398_vm3, %v1453_v27  ;;  %2377 = vmatmul.mubr.msk.bf16.vlgmr.msra.gmra.mrb[40].mxu1 %vm398_vm3, %v1454_v28 }
 0xf99   :  { %2384 = vmatprep.mubr.msk.bf16.mxu0 %vm2633_vm1, %v2632_v15  ;;  %2392 = vmatprep.mubr.msk.bf16.mxu1 %vm2633_vm1, %v2632_v15 }
 0xf9a   :  { %2381 = vmatpush3.bf16.msra.mxu0 %v2504_v36 }
 0xf9b   :  { %2382 = vmatprep.subr.bf16.mxu0 %v2632_v15 }
 0xf9e   :  { %2383 = vmatpush3.bf16.msra.mxu0 %v2505_v40 }
 0xf9f   :  { %2396 = vmatprep.subr.bf16.mxu0 %v2632_v15 }
 0xffc   :  { %v1495_v29 = vpop.f32.mrb[32].mxu0 }
 0xffd   :  { %v2360_v30 = vpop.f32.mrb[33].mxu0 }
 0xffe   :  { %v1498_v54 = vpop.f32.mrb[34].mxu0 }
 0xfff   :  { %v2361_v33 = vpop.f32.mrb[35].mxu0 }
0x1063   :  { %v1542_v37 = vpop.f32.mrb[36].mxu1 }
0x1064   :  { %v2366_v38 = vpop.f32.mrb[37].mxu1 }
0x1065   :  { %v1545_v41 = vpop.f32.mrb[38].mxu1 }
0x1066   :  { %v2473_v43 = vpack.i.bf16 %v1545_v41, %v1542_v37  ;;  %v2367_v44 = vpop.f32.mrb[39].mxu1  ;;  %v2123_v37 = vld [vmem:[%s3208_s8 + $0x1] ss:$0 sm:$0xff] }
0x1068   :  { %2474 = vrot.lane.b32.xlu1 %v2473_v43, %s2639_s0  ;;  %v2124_v43 = vld [vmem:[%s3209_s9 + $0x1] ss:$0 sm:$0xff] }
0x106b   :  { %v1589_v45 = vpop.f32.mrb[36].mxu0  ;;  %v1636_v46 = vpop.f32.mrb[40].mxu1 }
0x106c   :  { %v2372_v47 = vpop.f32.mrb[37].mxu0  ;;  %v2378_v31 = vpop.f32.mrb[41].mxu1 }
0x106d   :  { %v1592_v32 = vpop.f32.mrb[38].mxu0  ;;  %v1639_v48 = vpop.f32.mrb[42].mxu1  ;;  %v2508_v31 = vld [vmem:[%s3212_s12 + $0x40] sm:$0xff]  }
0x106e   :  { %v2478_v51 = vpack.i.bf16 %v1592_v32, %v1589_v45  ;;  %v2483_v42 = vpack.i.bf16 %v1639_v48, %v1636_v46  ;;  %v2373_v52 = vpop.f32.mrb[39].mxu0  ;;  %v2379_v53 = vpop.f32.mrb[43].mxu1  ;;  %v2509_v32 = vld [vmem:[%s3212_s12 + $0x48] sm:$0xff]   ;;  %v2510_v48 = vld [vmem:[%s3212_s12 + $0x50] sm:$0xff]  }
0x106f   :  { %v2513_v52 = vld [vmem:[%s3212_s12 + $0x68] sm:$0xff]   ;;  %v2514_v53 = vld [vmem:[%s3212_s12 + $0x70] sm:$0xff]  }
0x1070   :  { %2479 = vrot.lane.b32.xlu0 %v2478_v51, %s2640_s17  ;;  %2484 = vrot.lane.b32.xlu1 %v2483_v42, %s2641_s18  ;;  %v2511_v51 = vld [vmem:[%s3212_s12 + $0x58] sm:$0xff]   ;;  %v2512_v42 = vld [vmem:[%s3212_s12 + $0x60] sm:$0xff]  }
0x10da   :  { %v2475_v55 = vpop.permute.xlu1 %2474 }
0x10db   :  { %v2477_v56 = vunpack.i.h.bf16 %v2475_v55  ;;  %v2476_v57 = vunpack.i.l.bf16 %v2475_v55  ;;  %v2515_v55 = vld [vmem:[%s3212_s12 + $0x78] sm:$0xff]  }
0x10dd   :  { %v1668_v2 = vsel %vm200_vm2, %v1498_v54, %v2477_v56  ;;  %v1667_v3 = vsel %vm200_vm2, %v1495_v29, %v2476_v57  ;;  %v2130_v56 = vld [vmem:[%s3211_s11 + $0x1] ss:$0 sm:$0xff] }
0x10e2   :  { %v2480_v58 = vpop.permute.xlu0 %2479  ;;  %v2485_v59 = vpop.permute.xlu1 %2484 }
0x10e3   :  { %v2482_v60 = vunpack.i.h.bf16 %v2480_v58  ;;  %v2481_v61 = vunpack.i.l.bf16 %v2480_v58  ;;  %v2487_v62 = vunpack.i.h.bf16 %v2485_v59  ;;  %v2486_v0 = vunpack.i.l.bf16 %v2485_v59 }
0x10e5   :  { %v1669_v4 = vsel %vm398_vm3, %v1667_v3, %v2481_v61  ;;  %v1670_v5 = vsel %vm398_vm3, %v1668_v2, %v2482_v60 }
0x10e6   :  { %v1672_v6 = vsel %vm707_vm4, %v1670_v5, %v2487_v62  ;;  %v1671_v7 = vsel %vm707_vm4, %v1669_v4, %v2486_v0 }
0x10e7   :  { %v1673_v8 = vpack.c.bf16 %v1672_v6, %v1671_v7 }
0x10e9   :  { %2385 = vmatmul.mubr.msk.bf16.vlgmr.msra.gmra.mrb[40].mxu0 %vm61_vm0, %v1673_v8 }
0x10ea   :  { %2412 = vmatprep.mubr.msk.bf16.mxu0 %vm2633_vm1, %v2632_v15  ;;  %2397 = vmatpush3.bf16.msra.mxu0 %v2508_v31 }
0x10eb   :  { %2398 = vmatprep.subr.bf16.mxu0 %v2632_v15 }
0x10ee   :  { %2399 = vmatpush3.bf16.msra.mxu0 %v2509_v32  ;;  %v2163_v32 = vld [vmem:[%s3215_s15 + $0x1] ss:$0 sm:$0xff] }
0x10ef   :  { %2400 = vmatprep.subr.bf16.mxu0 %v2632_v15 }
0x10f2   :  { %2401 = vmatpush3.bf16.msra.mxu0 %v2510_v48 }
0x10f3   :  { %2402 = vmatprep.subr.bf16.mxu0 %v2632_v15 }
0x10f6   :  { %2403 = vmatpush3.bf16.msra.mxu0 %v2511_v51 }
0x10f7   :  { %2404 = vmatprep.subr.bf16.mxu0 %v2632_v15 }
0x10fa   :  { %2405 = vmatpush3.bf16.msra.mxu0 %v2512_v42 }
0x10fb   :  { %2406 = vmatprep.subr.bf16.mxu0 %v2632_v15 }
0x10fe   :  { %2407 = vmatpush3.bf16.msra.mxu0 %v2513_v52 }
0x10ff   :  { %2408 = vmatprep.subr.bf16.mxu0 %v2632_v15 }
0x1102   :  { %2409 = vmatpush3.bf16.msra.mxu0 %v2514_v53 }
0x1103   :  { %2410 = vmatprep.subr.bf16.mxu0 %v2632_v15 }
0x1106   :  { %2411 = vmatpush3.bf16.msra.mxu0 %v2515_v55 }
0x11bc   :  { %v1736_v9 = vpop.f32.mrb[40].mxu0 }
0x11bd   :  { %v1737_v39 = vadd.f32 %v2117_v34, %v1736_v9  ;;  %v2386_v35 = vpop.f32.mrb[41].mxu0 }
0x11be   :  { %v1739_v10 = vpop.f32.mrb[42].mxu0 }
0x11bf   :  { %v1740_v11 = vadd.f32 %v2117_v34, %v1739_v10  ;;  %v2387_v12 = vpop.f32.mrb[43].mxu0  ;;  %v1743_v13 = vadd.f32 %v1737_v39, %v2984_v17 }
0x11c1   :  { %v1749_v14 = vsel %vm61_vm0, %v1743_v13, 0.0  ;;  %v1744_v16 = vadd.f32 %v1740_v11, %v2986_v18  ;;  %v2506_v18 = vld [vmem:[%s3210_s10 + $0x10] sm:$0xff]   ;;  %s2608_s10 = scalar_lea.vmem %s2050_s19, 256 }
0x11c2   :  { %1750 = vadd.xlane.f32.xlu0 %v1749_v14  ;;  %2389 = vmatpush3.bf16.msra.mxu1 %v2506_v18  ;;  %p2609_p0 = scmp.ne.s32.totalorder %s2050_s19, %s2608_s10  ;;  %p2614_p2 = scmp.lt.s32.totalorder %s2608_s10, %s2608_s10 }
0x11c3   :  { %v1752_v19 = vsel %vm61_vm0, %v1744_v16, 0.0  ;;  %2390 = vmatprep.subr.bf16.mxu1 %v2632_v15 }
0x11c4   :  { %1753 = vadd.xlane.f32.xlu1 %v1752_v19  ;;  %v2151_v19 = vld [vmem:[%s3213_s13 + $0x1] ss:$0 sm:$0xff]  ;;  %p2615_p3 = por %p2614_p2, %p2613_p1 }
0x11c6   :  { %2391 = vmatpush3.bf16.msra.mxu1 %v2507_v26  ;;  %p2616_p4 = pnand %p2615_p3, %p2609_p0 }
0x124f   :  { %v1751_v20 = vpop.xlane.xlu0 %1750 }
0x1250   :  { %v1755_v21 = vmul.f32 0.03125, %v1751_v20 }
0x1251   :  { %v1754_v63 = vpop.xlane.xlu1 %1753 }
0x1252   :  { %v1757_v22 = vsub.f32 %v1743_v13, %v1755_v21  ;;  %v1756_v23 = vmul.f32 0.03125, %v1754_v63 }
0x1254   :  { %v1758_v24 = vsub.f32 %v1744_v16, %v1756_v23  ;;  %v1759_v25 = vmul.f32 %v1757_v22, %v1757_v22 }
0x1256   :  { %v1761_v49 = vsel %vm61_vm0, %v1759_v25, 0.0  ;;  %v1760_v1 = vmul.f32 %v1758_v24, %v1758_v24 }
0x1257   :  { %1762 = vadd.xlane.f32.xlu0 %v1761_v49 }
0x1258   :  { %v1764_v17 = vsel %vm61_vm0, %v1760_v1, 0.0 }
0x125b   :  { %1765 = vadd.xlane.f32.xlu0 %v1764_v17 }
0x12e4   :  { %v1763_v50 = vpop.xlane.xlu0 %1762 }
0x12e5   :  { %v1767_v27 = vmul.f32 0.03125, %v1763_v50 }
0x12e7   :  { %v1769_v28 = vadd.f32 1e-12, %v1767_v27 }
0x12e8   :  { %v1766_v29 = vpop.xlane.xlu0 %1765 }
0x12e9   :  { %2596 = vrsqrt.f32 %v1769_v28  ;;  %v1768_v30 = vmul.f32 0.03125, %v1766_v29 }
0x12eb   :  { %v1770_v54 = vadd.f32 1e-12, %v1768_v30 }
0x12ed   :  { %2598 = vrsqrt.f32 %v1770_v54 }
0x12f3   :  { %v2597_v33 = vpop.eup %2596 }
0x12f4   :  { %v1773_v36 = vmul.f32 %v2597_v33, %v1757_v22 }
0x12f6   :  { %v1781_v40 = vmul.f32 %v2123_v37, %v1773_v36 }
0x12f7   :  { %v2599_v38 = vpop.eup %2598 }
0x12f8   :  { %v1774_v41 = vmul.f32 %v2599_v38, %v1758_v24  ;;  %v3129_v45 = vadd.f32 %v2124_v43, %v1781_v40 }
0x12fa   :  { %v1782_v44 = vmul.f32 %v2123_v37, %v1774_v41 }
0x12fc   :  { %v3131_v46 = vadd.f32 %v2124_v43, %v1782_v44 }
0x12fe   :  { %v1791_v47 = vpack.c.bf16 %v3131_v46, %v3129_v45 }
0x1300   :  { %2393 = vmatmul.mubr.msk.bf16.vlgmr.msra.gmra.mrb[44].mxu1 %vm61_vm0, %v1791_v47 }
0x13d3   :  { %v1854_v57 = vpop.f32.mrb[44].mxu1 }
0x13d4   :  { %v1855_v58 = vadd.f32 %v2130_v56, %v1854_v57  ;;  %v2394_v59 = vpop.f32.mrb[45].mxu1 }
0x13d5   :  { %v1857_v60 = vpop.f32.mrb[46].mxu1 }
0x13d6   :  { %v1863_v61 = vmul.f32 0.044715, %v1855_v58  ;;  %v1858_v62 = vadd.f32 %v2130_v56, %v1857_v60  ;;  %v2395_v0 = vpop.f32.mrb[47].mxu1  ;;  %v1861_v10 = vmul.f32 0.5, %v1855_v58 }
0x13d8   :  { %v1865_v2 = vmul.f32 %v1863_v61, %v1855_v58  ;;  %v1864_v3 = vmul.f32 0.044715, %v1858_v62  ;;  %v1862_v11 = vmul.f32 0.5, %v1858_v62 }
0x13da   :  { %v1867_v4 = vmul.f32 %v1865_v2, %v1855_v58  ;;  %v1866_v5 = vmul.f32 %v1864_v3, %v1858_v62 }
0x13dc   :  { %v1869_v6 = vadd.f32 %v1867_v4, %v1855_v58  ;;  %v1868_v7 = vmul.f32 %v1866_v5, %v1858_v62 }
0x13de   :  { %v1871_v8 = vmul.f32 0.7978846, %v1869_v6  ;;  %v1870_v15 = vadd.f32 %v1868_v7, %v1858_v62 }
0x13e0   :  { %2600 = vtanh.f32 %v1871_v8  ;;  %v1872_v34 = vmul.f32 0.7978846, %v1870_v15 }
0x13e2   :  { %2602 = vtanh.f32 %v1872_v34 }
0x13ea   :  { %v2601_v9 = vpop.eup %2600 }
0x13eb   :  { %v1875_v39 = vadd.f32 1.0, %v2601_v9 }
0x13ec   :  { %v2603_v35 = vpop.eup %2602 }
0x13ed   :  { %v1876_v12 = vadd.f32 1.0, %v2603_v35  ;;  %v1877_v13 = vmul.f32 %v1875_v39, %v1861_v10 }
0x13ef   :  { %v1878_v14 = vmul.f32 %v1876_v12, %v1862_v11 }
0x13f1   :  { %v1879_v16 = vpack.c.bf16 %v1878_v14, %v1877_v13 }
0x13f3   :  { %2413 = vmatmul.mubr.bf16.vlgmr.msra.gmra.mrb[44].mxu0 %v1879_v16 }
0x14c6   :  { %v1987_v20 = vpop.f32.mrb[44].mxu0 }
0x14c7   :  { %v1988_v21 = vadd.f32 %v2151_v19, %v1987_v20  ;;  %v2414_v63 = vpop.f32.mrb[45].mxu0 }
0x14c8   :  { %v1990_v22 = vpop.f32.mrb[46].mxu0 }
0x14c9   :  { %v1991_v23 = vadd.f32 %v2151_v19, %v1990_v22  ;;  %v2415_v24 = vpop.f32.mrb[47].mxu0  ;;  %v1994_v25 = vadd.f32 %v1988_v21, %v3129_v45 }
0x14cb   :  { %v2000_v49 = vsel %vm61_vm0, %v1994_v25, 0.0  ;;  %v1995_v1 = vadd.f32 %v1991_v23, %v3131_v46  ;;  %v2162_v46 = vld [vmem:[%s3214_s14 + $0x1] ss:$0 sm:$0xff] }
0x14cc   :  { %2001 = vadd.xlane.f32.xlu0 %v2000_v49 }
0x14cd   :  { %v2003_v17 = vsel %vm61_vm0, %v1995_v1, 0.0 }
0x14ce   :  { %2004 = vadd.xlane.f32.xlu1 %v2003_v17 }
0x1559   :  { %v2002_v18 = vpop.xlane.xlu0 %2001 }
0x155a   :  { %v2006_v26 = vmul.f32 0.03125, %v2002_v18 }
0x155b   :  { %v2005_v50 = vpop.xlane.xlu1 %2004 }
0x155c   :  { %v2008_v27 = vsub.f32 %v1994_v25, %v2006_v26  ;;  %v2007_v28 = vmul.f32 0.03125, %v2005_v50 }
0x155e   :  { %v2009_v29 = vsub.f32 %v1995_v1, %v2007_v28  ;;  %v2010_v30 = vmul.f32 %v2008_v27, %v2008_v27 }
0x1560   :  { %v2012_v54 = vsel %vm61_vm0, %v2010_v30, 0.0  ;;  %v2011_v33 = vmul.f32 %v2009_v29, %v2009_v29 }
0x1561   :  { %2013 = vadd.xlane.f32.xlu0 %v2012_v54 }
0x1562   :  { %v2015_v36 = vsel %vm61_vm0, %v2011_v33, 0.0 }
0x1563   :  { %2016 = vadd.xlane.f32.xlu1 %v2015_v36 }
0x15ee   :  { %v2014_v37 = vpop.xlane.xlu0 %2013 }
0x15ef   :  { %v2018_v38 = vmul.f32 0.03125, %v2014_v37 }
0x15f0   :  { %v2017_v40 = vpop.xlane.xlu1 %2016 }
0x15f1   :  { %v2020_v41 = vadd.f32 1e-12, %v2018_v38  ;;  %v2019_v43 = vmul.f32 0.03125, %v2017_v40 }
0x15f3   :  { %2604 = vrsqrt.f32 %v2020_v41  ;;  %v2021_v44 = vadd.f32 1e-12, %v2019_v43 }
0x15f5   :  { %2606 = vrsqrt.f32 %v2021_v44 }
0x15fd   :  { %v2605_v45 = vpop.eup %2604 }
0x15fe   :  { %v2024_v47 = vmul.f32 %v2605_v45, %v2008_v27 }
0x15ff   :  { %v2607_v31 = vpop.eup %2606 }
0x1600   :  { %v2025_v48 = vmul.f32 %v2607_v31, %v2009_v29  ;;  %v2032_v51 = vmul.f32 %v2162_v46, %v2024_v47 }
0x1602   :  { %v2033_v42 = vmul.f32 %v2162_v46, %v2025_v48  ;;  %v2040_v52 = vadd.f32 %v2163_v32, %v2032_v51 }
0x1604   :  { %v2041_v53 = vadd.f32 %v2163_v32, %v2033_v42  ;;  %2042 = vst.msk [vmem:[#allocation2] sm:$0xff] %vm61_vm0, %v2040_v52 }
0x1606   :  { %2043 = vst.msk [vmem:[#allocation2 + $0x8] sm:$0xff] %vm61_vm0, %v2041_v53 }
0x1607   :  { %2619 = shalt.err (!%p2616_p4)
}
0x1608   :  { %s2620_s23 = scalar_lea.hbm %s3216_s16, 256 }
0x1609   :  { %p2621_p5 = scmp.ne.s32.totalorder %s3216_s16, %s2620_s23  ;;  %p2624_p6 = scmp.lt.u32.totalorder %s2620_s23, %s3216_s16 }
0x160b   :  { %p2626_p7 = pnand %p2624_p6, %p2621_p5 }
0x160d   :  { %2629 = shalt.err (!%p2626_p7)
}
0x160e   :  { %s2643_s26 = smov 128  }
0x160f   :  { %2055 = dma.vmem_to_hbm [thread:$0]  %s2050_s19, 256, %s3216_s16, [#allocation3], %s2643_s26, %s2643_s26, %s2639_s0  }
0x1610   :  { %2630 = dma.done.wait [#allocation3], 256  }
0x1611   :  { %2631 = vsyncadd [#allocation3], 4294967040 }
0x1612   :  { %2059 = vsyncpa [#allocation3], 1 }

</bundles_post_ra>
